<compile_context>
chip_gen: v7x
topology: tpu7x:2x2x1
jax: 0.10.0
libtpu: 0.0.40
codegen_flags: <defaults>
</compile_context>

<pallas_src>
import numpy as np
import jax
import jax.numpy as jnp
from jax.experimental import pallas as pl
from jax.experimental.pallas import tpu as pltpu

LANE = 128


# ----------------------------------------------------------------------------
# Config helpers (verbatim semantics of the PyTorch get_configs)
# ----------------------------------------------------------------------------
def get_configs():
    level_config = {'level1': [4 * (i + 1) for i in range(4)],
                    'level2': [4 * (i + 1) for i in range(8)],
                    'level3': [4 * (i + 1) for i in range(16)]}
    model_config = {}
    for i in range(0, 7):
        model_config[i] = level_config['level1']
    for i in range(7, 13):
        model_config[i] = level_config['level2']
    for i in range(13, 20):
        model_config[i] = level_config['level3']
    return level_config, model_config


def _round_up(x, m):
    return (x + m - 1) // m * m


def bn_fold(gamma, beta, mean, var, eps=1e-5):
    scale = gamma / jnp.sqrt(var + eps)
    bias = beta - mean * scale
    return scale.astype(jnp.float32), bias.astype(jnp.float32)


# ----------------------------------------------------------------------------
# One-time parameter preparation (BN folded into conv weights, padded, bf16)
# ----------------------------------------------------------------------------
def prepare_block_params(params, stride):
    conv1_w = params['conv1_w']              # (Cmid, Cin, 3, 3)
    conv2_w = params['conv2_w']              # (Cout, Cmid, 3, 3)
    Cmid, Cin = int(conv1_w.shape[0]), int(conv1_w.shape[1])
    Cout = int(conv2_w.shape[0])
    Cm = _round_up(Cmid, LANE)
    Co = _round_up(Cout, LANE)
    has_proj = (Cout != Cin) or (stride != 1)

    # conv1 + BN1 folded:  h1 = relu(taps @ w1 + b1)
    s1, b1 = bn_fold(*params['bn1'])
    w1 = jnp.transpose(conv1_w, (2, 3, 1, 0)).reshape(9 * Cin, Cmid) * s1[None, :]
    w1 = jnp.pad(w1, ((0, 0), (0, Cm - Cmid))).astype(jnp.bfloat16)
    b1 = jnp.pad(b1, (0, Cm - Cmid)).reshape(1, Cm).astype(jnp.float32)

    # conv2 + BN2 folded (BN2 applies ONLY to the conv2 path, NOT the residual)
    s2, b2 = bn_fold(*params['bn2'])
    w2 = jnp.transpose(conv2_w, (2, 3, 1, 0)).reshape(9, Cmid, Cout) * s2[None, None, :]
    w2 = jnp.pad(w2, ((0, 0), (0, Cm - Cmid), (0, Co - Cout)))
    w2 = w2.reshape(9 * Cm, Co).astype(jnp.bfloat16)
    b2 = jnp.pad(b2, (0, Co - Cout)).reshape(1, Co).astype(jnp.float32)

    prep = dict(w1=w1, b1=b1, w2=w2, b2=b2,
                Cin=Cin, Cmid=Cmid, Cout=Cout, Cm=Cm, Co=Co,
                stride=stride, has_proj=has_proj)

    if has_proj:
        ss, bs = bn_fold(*params['sc_bn'])
        ws = params['sc_conv_w'][:, :, 0, 0].T * ss[None, :]     # (Cin, Cout)
        ws = jnp.pad(ws, ((0, 0), (0, Co - Cout))).astype(jnp.bfloat16)
        bs = jnp.pad(bs, (0, Co - Cout)).reshape(1, Co).astype(jnp.float32)
        prep['ws'] = ws
        prep['bs'] = bs
    return prep


# ----------------------------------------------------------------------------
# Fused kernel: conv1+BN1+ReLU -> halo VMEM scratch -> conv2 (one big dot)
#               + BN2 (folded) + shortcut + ReLU
# ----------------------------------------------------------------------------
def _make_block_kernel(B, Ho, Wo, Cm, Co, has_proj):
    P = Ho * Wo
    BP = B * P

    def kernel(*refs):
        if has_proj:
            (t1_ref, w1_ref, b1_ref,
             xs_ref, ws_ref, bs_ref,
             w2_ref, b2_ref,
             o_ref, h1p_ref, slab_ref) = refs
        else:
            (t1_ref, w1_ref, b1_ref,
             res_ref,
             w2_ref, b2_ref,
             o_ref, h1p_ref, slab_ref) = refs

        f32 = jnp.float32

        # ---- zero ONLY the 1-wide halo border of the h1 scratch (interior is
        #      fully overwritten below on every grid step) ----
        h1p_ref[:, pl.ds(0, 1), :, :] = jnp.zeros((B, 1, Wo + 2, Cm), f32)
        h1p_ref[:, pl.ds(Ho + 1, 1), :, :] = jnp.zeros((B, 1, Wo + 2, Cm), f32)
        h1p_ref[:, :, pl.ds(0, 1), :] = jnp.zeros((B, Ho + 2, 1, Cm), f32)
        h1p_ref[:, :, pl.ds(Wo + 1, 1), :] = jnp.zeros((B, Ho + 2, 1, Cm), f32)

        # ---- conv1 (3x3, stride) + BN1 (folded) + ReLU ----
        k1 = t1_ref.shape[-1]
        t1 = t1_ref[...].reshape(BP, k1)                          # bf16
        a1 = jnp.dot(t1, w1_ref[...], preferred_element_type=f32)  # [BP, Cm]
        h1 = jnp.maximum(a1 + b1_ref[...], 0.0)
        h1p_ref[:, pl.ds(1, Ho), pl.ds(1, Wo), :] = h1.reshape(B, Ho, Wo, Cm)

        # ---- conv2 im2col slab (bf16) built from the VMEM-resident halo
        #      scratch: 9 static-offset window copies into 128-aligned lane
        #      slices, then ONE K = 9*Cm contraction on the MXU ----
        for k in range(9):
            dy, dx = divmod(k, 3)
            win = h1p_ref[:, pl.ds(dy, Ho), pl.ds(dx, Wo), :]     # (B,Ho,Wo,Cm)
            slab_ref[:, pl.ds(k * Cm, Cm)] = (
                win.reshape(BP, Cm).astype(slab_ref.dtype))

        # ---- shortcut: 1x1 conv + BN (folded), or identity ----
        if has_proj:
            cs = xs_ref.shape[-1]
            xs = xs_ref[...].reshape(BP, cs)
            acc0 = jnp.dot(xs, ws_ref[...],
                           preferred_element_type=f32) + bs_ref[...]
        else:
            acc0 = res_ref[...].reshape(BP, Co).astype(f32)

        # ---- conv2 + BN2 (conv path only) + residual add + ReLU ----
        y = jnp.dot(slab_ref[...], w2_ref[...], preferred_element_type=f32)
        y = y + b2_ref[...] + acc0
        o_ref[...] = jnp.maximum(y, 0.0).reshape(B, P, Co).astype(o_ref.dtype)

    return kernel


def _pick_b_tile(n, p):
    """Largest batch tile (divisor of n) with b*p <= 1024, preferring >= 256 rows."""
    best = 1
    for bt in range(1, n + 1):
        if bt * p > 1024:
            break
        if n % bt != 0:
            continue
        best = bt
        if bt * p >= 256:
            break
    return best


# ----------------------------------------------------------------------------
# MutableBlock forward (selected slimmable width resolved at trace time)
# ----------------------------------------------------------------------------
def mutable_block_forward(x_nchw, prep):
    stride = prep['stride']
    has_proj = prep['has_proj']
    Cin, Cout = prep['Cin'], prep['Cout']
    Cm, Co = prep['Cm'], prep['Co']

    x = jnp.transpose(x_nchw, (0, 2, 3, 1)).astype(jnp.float32)   # NCHW->NHWC
    N, H, W, _ = x.shape
    Ho = (H - 1) // stride + 1
    Wo = (W - 1) // stride + 1
    P = Ho * Wo
    K1 = 9 * Cin

    B_TILE = _pick_b_tile(N, P)
    grid = (N // B_TILE,)

    # conv1 im2col taps, tap-major / channel-fast: [N, P, 9*Cin] (bf16, unpadded)
    xp = jnp.pad(x, ((0, 0), (1, 1), (1, 1), (0, 0)))
    taps = [xp[:, dy:dy + stride * (Ho - 1) + 1:stride,
                  dx:dx + stride * (Wo - 1) + 1:stride, :]
            for dy in range(3) for dx in range(3)]
    t1 = jnp.concatenate(taps, axis=-1).reshape(N, P, K1).astype(jnp.bfloat16)

    inputs = [t1, prep['w1'], prep['b1']]
    in_specs = [
        pl.BlockSpec((B_TILE, P, K1), lambda b: (b, 0, 0)),
        pl.BlockSpec((K1, Cm), lambda b: (0, 0)),
        pl.BlockSpec((1, Cm), lambda b: (0, 0)),
    ]

    if has_proj:
        xs = x[:, ::stride, ::stride, :][:, :Ho, :Wo, :].reshape(N, P, Cin)
        xs = xs.astype(jnp.bfloat16)
        inputs += [xs, prep['ws'], prep['bs']]
        in_specs += [
            pl.BlockSpec((B_TILE, P, Cin), lambda b: (b, 0, 0)),
            pl.BlockSpec((Cin, Co), lambda b: (0, 0)),
            pl.BlockSpec((1, Co), lambda b: (0, 0)),
        ]
    else:
        res = jnp.pad(x.reshape(N, P, Cin),
                      ((0, 0), (0, 0), (0, Co - Cin))).astype(jnp.float32)
        inputs += [res]
        in_specs += [pl.BlockSpec((B_TILE, P, Co), lambda b: (b, 0, 0))]

    inputs += [prep['w2'], prep['b2']]
    in_specs += [
        pl.BlockSpec((9 * Cm, Co), lambda b: (0, 0)),
        pl.BlockSpec((1, Co), lambda b: (0, 0)),
    ]

    kernel = _make_block_kernel(B_TILE, Ho, Wo, Cm, Co, has_proj)

    out = pl.pallas_call(
        kernel,
        out_shape=jax.ShapeDtypeStruct((N, P, Co), jnp.float32),
        grid_spec=pltpu.PrefetchScalarGridSpec(
            num_scalar_prefetch=0,
            grid=grid,
            in_specs=in_specs,
            out_specs=pl.BlockSpec((B_TILE, P, Co), lambda b: (b, 0, 0)),
            scratch_shapes=[
                pltpu.VMEM((B_TILE, Ho + 2, Wo + 2, Cm), jnp.float32),  # halo h1
                pltpu.VMEM((B_TILE * P, 9 * Cm), jnp.bfloat16),         # im2col slab
            ]),
        compiler_params=pltpu.CompilerParams(
            dimension_semantics=("parallel",),
            vmem_limit_bytes=32 * 1024 * 1024),
    )(*inputs)

    out = out[:, :, :Cout].reshape(N, Ho, Wo, Cout)
    return jnp.transpose(out, (0, 3, 1, 2))                      # NHWC -> NCHW


# ----------------------------------------------------------------------------
# Deterministic synthetic parameters (shapes follow MutableBlock.__init__)
# ----------------------------------------------------------------------------
def init_params(key, cin, cmid, cout):
    ks = jax.random.split(key, 6)

    def conv_w(k, co, ci, kh, kw):
        fan = ci * kh * kw
        return jax.random.normal(k, (co, ci, kh, kw), jnp.float32) / np.sqrt(fan)

    def bn(k, c):
        k1, k2, k3, k4 = jax.random.split(k, 4)
        gamma = 1.0 + 0.1 * jax.random.normal(k1, (c,), jnp.float32)
        beta = 0.1 * jax.random.normal(k2, (c,), jnp.float32)
        mean = 0.1 * jax.random.normal(k3, (c,), jnp.float32)
        var = jnp.abs(jax.random.normal(k4, (c,), jnp.float32)) + 0.5
        return gamma, beta, mean, var

    return {
        'conv1_w': conv_w(ks[0], cmid, cin, 3, 3),
        'bn1': bn(ks[1], cmid),
        'conv2_w': conv_w(ks[2], cout, cmid, 3, 3),
        'bn2': bn(ks[3], cout),
        'sc_conv_w': conv_w(ks[4], cout, cin, 1, 1),
        'sc_bn': bn(ks[5], cout),
    }


# ----------------------------------------------------------------------------
# Pure-JAX reference (mirrors the PyTorch forward, eval-mode BN)
# ----------------------------------------------------------------------------
def reference(x, params, stride):
    def conv(x, w, stride, padding):
        return jax.lax.conv_general_dilated(
            x, w, (stride, stride), [(padding, padding), (padding, padding)],
            dimension_numbers=('NCHW', 'OIHW', 'NCHW'))

    def bn(x, p):
        g, b, m, v = p
        return ((x - m[None, :, None, None])
                / jnp.sqrt(v[None, :, None, None] + 1e-5)
                * g[None, :, None, None] + b[None, :, None, None])

    h = jax.nn.relu(bn(conv(x, params['conv1_w'], stride, 1), params['bn1']))
    res = bn(conv(h, params['conv2_w'], 1, 1), params['bn2'])
    if res.shape[1] != x.shape[1] or res.shape[2] != x.shape[2]:
        res = res + bn(conv(x, params['sc_conv_w'], stride, 0), params['sc_bn'])
    else:
        res = res + x
    return jax.nn.relu(res)


if __name__ == "__main__":
    key = jax.random.PRNGKey(0)
    kx, kp, kx2, kp2 = jax.random.split(key, 4)
    lc, mc = get_configs()

    # Case 1: MutableBlock(idx_list=[0, 1], stride=2) -> projection shortcut.
    # Slimmable widths: Cin=mc[0][1]=8, Cmid=mc[1][1]=8, Cout=mc[2][3]=16.
    cin, cmid, cout = mc[0][1], mc[1][1], mc[2][3]               # 8, 8, 16
    stride = 2
    x = jax.random.normal(kx, (2, cin, 16, 16), jnp.float32)     # NCHW input
    params = init_params(kp, cin, cmid, cout)
    prep = prepare_block_params(params, stride)
    out = jax.block_until_ready(mutable_block_forward(x, prep))
    ref = reference(x, params, stride)
    np.testing.assert_allclose(np.asarray(out), np.asarray(ref),
                               rtol=5e-2, atol=5e-2)
    assert out.shape == (2, cout, 8, 8)

    # Case 2: stride=1, Cin == Cout -> identity shortcut path.
    cin2 = cmid2 = cout2 = mc[0][1]                              # 8
    x2 = jax.random.normal(kx2, (2, cin2, 16, 16), jnp.float32)
    params2 = init_params(kp2, cin2, cmid2, cout2)
    prep2 = prepare_block_params(params2, 1)
    out2 = jax.block_until_ready(mutable_block_forward(x2, prep2))
    ref2 = reference(x2, params2, 1)
    np.testing.assert_allclose(np.asarray(out2), np.asarray(ref2),
                               rtol=5e-2, atol=5e-2)
    assert out2.shape == (2, cout2, 16, 16)

    print("KERNEL_OK")
</pallas_src>

<mosaic_0001>
module attributes {stable_mosaic.version = 11 : i64} {
  func.func @kernel(%arg0: i32, %arg1: memref<2x64x72xbf16, #tpu.memory_space<vmem>>, %arg2: memref<72x128xbf16, #tpu.memory_space<vmem>>, %arg3: memref<1x128xf32, #tpu.memory_space<vmem>>, %arg4: memref<2x64x8xbf16, #tpu.memory_space<vmem>>, %arg5: memref<8x128xbf16, #tpu.memory_space<vmem>>, %arg6: memref<1x128xf32, #tpu.memory_space<vmem>>, %arg7: memref<1152x128xbf16, #tpu.memory_space<vmem>>, %arg8: memref<1x128xf32, #tpu.memory_space<vmem>>, %arg9: memref<2x64x128xf32, #tpu.memory_space<vmem>>, %arg10: memref<2x10x10x128xf32, #tpu.memory_space<vmem>>, %arg11: memref<128x1152xbf16, #tpu.memory_space<vmem>>) attributes {dimension_semantics = [#tpu.dimension_semantics<parallel>], iteration_bounds = array<i64: 1>, scalar_prefetch = 0 : i64, scratch_operands = 2 : i64, tpu.core_type = #tpu.core_type<tc>, window_params = [{transform_indices = @transform_0, window_bounds = array<i64: 2, 64, 72>}, {pipeline_mode = #tpu.pipeline_mode<synchronous>, transform_indices = @transform_1, window_bounds = array<i64: 72, 128>}, {pipeline_mode = #tpu.pipeline_mode<synchronous>, transform_indices = @transform_2, window_bounds = array<i64: 1, 128>}, {transform_indices = @transform_3, window_bounds = array<i64: 2, 64, 8>}, {pipeline_mode = #tpu.pipeline_mode<synchronous>, transform_indices = @transform_4, window_bounds = array<i64: 8, 128>}, {pipeline_mode = #tpu.pipeline_mode<synchronous>, transform_indices = @transform_5, window_bounds = array<i64: 1, 128>}, {pipeline_mode = #tpu.pipeline_mode<synchronous>, transform_indices = @transform_6, window_bounds = array<i64: 1152, 128>}, {pipeline_mode = #tpu.pipeline_mode<synchronous>, transform_indices = @transform_7, window_bounds = array<i64: 1, 128>}, {transform_indices = @transform_8, window_bounds = array<i64: 2, 64, 128>}]} {
    %cst = arith.constant 0.000000e+00 : f32
    %0 = vector.broadcast %cst : f32 to vector<2x1x10x128xf32>
    %c0 = arith.constant 0 : index
    %c0_0 = arith.constant 0 : index
    %c0_1 = arith.constant 0 : index
    %c0_2 = arith.constant 0 : index
    %1 = vector.load %arg10[%c0, %c0_0, %c0_1, %c0_2] : memref<2x10x10x128xf32, #tpu.memory_space<vmem>>, vector<2x1x10x128xf32>
    tpu.vector_store %arg10[%c0, %c0_0, %c0_1, %c0_2], %0 {strides = array<i32>} : memref<2x10x10x128xf32, #tpu.memory_space<vmem>>, vector<2x1x10x128xf32>,
    %cst_3 = arith.constant 0.000000e+00 : f32
    %2 = vector.broadcast %cst_3 : f32 to vector<2x1x10x128xf32>
    %c0_4 = arith.constant 0 : index
    %c9 = arith.constant 9 : index
    %c0_5 = arith.constant 0 : index
    %c0_6 = arith.constant 0 : index
    %3 = vector.load %arg10[%c0_4, %c9, %c0_5, %c0_6] : memref<2x10x10x128xf32, #tpu.memory_space<vmem>>, vector<2x1x10x128xf32>
    tpu.vector_store %arg10[%c0_4, %c9, %c0_5, %c0_6], %2 {strides = array<i32>} : memref<2x10x10x128xf32, #tpu.memory_space<vmem>>, vector<2x1x10x128xf32>,
    %cst_7 = arith.constant 0.000000e+00 : f32
    %4 = vector.broadcast %cst_7 : f32 to vector<2x10x1x128xf32>
    %c0_8 = arith.constant 0 : index
    %c0_9 = arith.constant 0 : index
    %c0_10 = arith.constant 0 : index
    %c0_11 = arith.constant 0 : index
    %5 = vector.load %arg10[%c0_8, %c0_9, %c0_10, %c0_11] : memref<2x10x10x128xf32, #tpu.memory_space<vmem>>, vector<2x10x1x128xf32>
    tpu.vector_store %arg10[%c0_8, %c0_9, %c0_10, %c0_11], %4 {strides = array<i32>} : memref<2x10x10x128xf32, #tpu.memory_space<vmem>>, vector<2x10x1x128xf32>,
    %cst_12 = arith.constant 0.000000e+00 : f32
    %6 = vector.broadcast %cst_12 : f32 to vector<2x10x1x128xf32>
    %c0_13 = arith.constant 0 : index
    %c0_14 = arith.constant 0 : index
    %c9_15 = arith.constant 9 : index
    %c0_16 = arith.constant 0 : index
    %7 = vector.load %arg10[%c0_13, %c0_14, %c9_15, %c0_16] : memref<2x10x10x128xf32, #tpu.memory_space<vmem>>, vector<2x10x1x128xf32>
    tpu.vector_store %arg10[%c0_13, %c0_14, %c9_15, %c0_16], %6 {strides = array<i32>} : memref<2x10x10x128xf32, #tpu.memory_space<vmem>>, vector<2x10x1x128xf32>,
    %c0_17 = arith.constant 0 : index
    %c0_18 = arith.constant 0 : index
    %c0_19 = arith.constant 0 : index
    %8 = vector.load %arg1[%c0_17, %c0_18, %c0_19] : memref<2x64x72xbf16, #tpu.memory_space<vmem>>, vector<2x64x72xbf16>
    %9 = vector.shape_cast %8 : vector<2x64x72xbf16> to vector<128x72xbf16>
    %c0_20 = arith.constant 0 : index
    %c0_21 = arith.constant 0 : index
    %10 = vector.load %arg2[%c0_20, %c0_21] : memref<72x128xbf16, #tpu.memory_space<vmem>>, vector<72x128xbf16>
    %cst_22 = arith.constant dense<0.000000e+00> : vector<128x128xf32>
    %11 = tpu.matmul %9, %10, %cst_22 {dimension_numbers = #tpu.dot_dimension_numbers<[1], [0], [0], [1], [0, 0, 1, 1], [], []>} : vector<128x72xbf16>, vector<72x128xbf16>, vector<128x128xf32> -> vector<128x128xf32>
    %c0_23 = arith.constant 0 : index
    %c0_24 = arith.constant 0 : index
    %12 = vector.load %arg3[%c0_23, %c0_24] : memref<1x128xf32, #tpu.memory_space<vmem>>, vector<1x128xf32>
    %13 = vector.broadcast %12 : vector<1x128xf32> to vector<128x128xf32>
    %14 = arith.addf %11, %13 : vector<128x128xf32>
    %cst_25 = arith.constant 0.000000e+00 : f32
    %15 = vector.broadcast %cst_25 : f32 to vector<128x128xf32>
    %16 = arith.maximumf %14, %15 : vector<128x128xf32>
    %17 = vector.shape_cast %16 : vector<128x128xf32> to vector<2x8x8x128xf32>
    %c0_26 = arith.constant 0 : index
    %c1 = arith.constant 1 : index
    %c1_27 = arith.constant 1 : index
    %c0_28 = arith.constant 0 : index
    %18 = vector.load %arg10[%c0_26, %c1, %c1_27, %c0_28] : memref<2x10x10x128xf32, #tpu.memory_space<vmem>>, vector<2x8x8x128xf32>
    tpu.vector_store %arg10[%c0_26, %c1, %c1_27, %c0_28], %17 {strides = array<i32>} : memref<2x10x10x128xf32, #tpu.memory_space<vmem>>, vector<2x8x8x128xf32>,
    %c0_29 = arith.constant 0 : index
    %c0_30 = arith.constant 0 : index
    %c0_31 = arith.constant 0 : index
    %c0_32 = arith.constant 0 : index
    %19 = vector.load %arg10[%c0_29, %c0_30, %c0_31, %c0_32] : memref<2x10x10x128xf32, #tpu.memory_space<vmem>>, vector<2x8x8x128xf32>
    %20 = vector.shape_cast %19 : vector<2x8x8x128xf32> to vector<128x128xf32>
    %21 = arith.truncf %20 : vector<128x128xf32> to vector<128x128xbf16>
    %c0_33 = arith.constant 0 : index
    %c0_34 = arith.constant 0 : index
    %22 = vector.load %arg11[%c0_33, %c0_34] : memref<128x1152xbf16, #tpu.memory_space<vmem>>, vector<128x128xbf16>
    tpu.vector_store %arg11[%c0_33, %c0_34], %21 {strides = array<i32>} : memref<128x1152xbf16, #tpu.memory_space<vmem>>, vector<128x128xbf16>,
    %c0_35 = arith.constant 0 : index
    %c0_36 = arith.constant 0 : index
    %c1_37 = arith.constant 1 : index
    %c0_38 = arith.constant 0 : index
    %23 = vector.load %arg10[%c0_35, %c0_36, %c1_37, %c0_38] : memref<2x10x10x128xf32, #tpu.memory_space<vmem>>, vector<2x8x8x128xf32>
    %24 = vector.shape_cast %23 : vector<2x8x8x128xf32> to vector<128x128xf32>
    %25 = arith.truncf %24 : vector<128x128xf32> to vector<128x128xbf16>
    %c0_39 = arith.constant 0 : index
    %c128 = arith.constant 128 : index
    %26 = vector.load %arg11[%c0_39, %c128] : memref<128x1152xbf16, #tpu.memory_space<vmem>>, vector<128x128xbf16>
    tpu.vector_store %arg11[%c0_39, %c128], %25 {strides = array<i32>} : memref<128x1152xbf16, #tpu.memory_space<vmem>>, vector<128x128xbf16>,
    %c0_40 = arith.constant 0 : index
    %c0_41 = arith.constant 0 : index
    %c2 = arith.constant 2 : index
    %c0_42 = arith.constant 0 : index
    %27 = vector.load %arg10[%c0_40, %c0_41, %c2, %c0_42] : memref<2x10x10x128xf32, #tpu.memory_space<vmem>>, vector<2x8x8x128xf32>
    %28 = vector.shape_cast %27 : vector<2x8x8x128xf32> to vector<128x128xf32>
    %29 = arith.truncf %28 : vector<128x128xf32> to vector<128x128xbf16>
    %c0_43 = arith.constant 0 : index
    %c256 = arith.constant 256 : index
    %30 = vector.load %arg11[%c0_43, %c256] : memref<128x1152xbf16, #tpu.memory_space<vmem>>, vector<128x128xbf16>
    tpu.vector_store %arg11[%c0_43, %c256], %29 {strides = array<i32>} : memref<128x1152xbf16, #tpu.memory_space<vmem>>, vector<128x128xbf16>,
    %c0_44 = arith.constant 0 : index
    %c1_45 = arith.constant 1 : index
    %c0_46 = arith.constant 0 : index
    %c0_47 = arith.constant 0 : index
    %31 = vector.load %arg10[%c0_44, %c1_45, %c0_46, %c0_47] : memref<2x10x10x128xf32, #tpu.memory_space<vmem>>, vector<2x8x8x128xf32>
    %32 = vector.shape_cast %31 : vector<2x8x8x128xf32> to vector<128x128xf32>
    %33 = arith.truncf %32 : vector<128x128xf32> to vector<128x128xbf16>
    %c0_48 = arith.constant 0 : index
    %c384 = arith.constant 384 : index
    %34 = vector.load %arg11[%c0_48, %c384] : memref<128x1152xbf16, #tpu.memory_space<vmem>>, vector<128x128xbf16>
    tpu.vector_store %arg11[%c0_48, %c384], %33 {strides = array<i32>} : memref<128x1152xbf16, #tpu.memory_space<vmem>>, vector<128x128xbf16>,
    %c0_49 = arith.constant 0 : index
    %c1_50 = arith.constant 1 : index
    %c1_51 = arith.constant 1 : index
    %c0_52 = arith.constant 0 : index
    %35 = vector.load %arg10[%c0_49, %c1_50, %c1_51, %c0_52] : memref<2x10x10x128xf32, #tpu.memory_space<vmem>>, vector<2x8x8x128xf32>
    %36 = vector.shape_cast %35 : vector<2x8x8x128xf32> to vector<128x128xf32>
    %37 = arith.truncf %36 : vector<128x128xf32> to vector<128x128xbf16>
    %c0_53 = arith.constant 0 : index
    %c512 = arith.constant 512 : index
    %38 = vector.load %arg11[%c0_53, %c512] : memref<128x1152xbf16, #tpu.memory_space<vmem>>, vector<128x128xbf16>
    tpu.vector_store %arg11[%c0_53, %c512], %37 {strides = array<i32>} : memref<128x1152xbf16, #tpu.memory_space<vmem>>, vector<128x128xbf16>,
    %c0_54 = arith.constant 0 : index
    %c1_55 = arith.constant 1 : index
    %c2_56 = arith.constant 2 : index
    %c0_57 = arith.constant 0 : index
    %39 = vector.load %arg10[%c0_54, %c1_55, %c2_56, %c0_57] : memref<2x10x10x128xf32, #tpu.memory_space<vmem>>, vector<2x8x8x128xf32>
    %40 = vector.shape_cast %39 : vector<2x8x8x128xf32> to vector<128x128xf32>
    %41 = arith.truncf %40 : vector<128x128xf32> to vector<128x128xbf16>
    %c0_58 = arith.constant 0 : index
    %c640 = arith.constant 640 : index
    %42 = vector.load %arg11[%c0_58, %c640] : memref<128x1152xbf16, #tpu.memory_space<vmem>>, vector<128x128xbf16>
    tpu.vector_store %arg11[%c0_58, %c640], %41 {strides = array<i32>} : memref<128x1152xbf16, #tpu.memory_space<vmem>>, vector<128x128xbf16>,
    %c0_59 = arith.constant 0 : index
    %c2_60 = arith.constant 2 : index
    %c0_61 = arith.constant 0 : index
    %c0_62 = arith.constant 0 : index
    %43 = vector.load %arg10[%c0_59, %c2_60, %c0_61, %c0_62] : memref<2x10x10x128xf32, #tpu.memory_space<vmem>>, vector<2x8x8x128xf32>
    %44 = vector.shape_cast %43 : vector<2x8x8x128xf32> to vector<128x128xf32>
    %45 = arith.truncf %44 : vector<128x128xf32> to vector<128x128xbf16>
    %c0_63 = arith.constant 0 : index
    %c768 = arith.constant 768 : index
    %46 = vector.load %arg11[%c0_63, %c768] : memref<128x1152xbf16, #tpu.memory_space<vmem>>, vector<128x128xbf16>
    tpu.vector_store %arg11[%c0_63, %c768], %45 {strides = array<i32>} : memref<128x1152xbf16, #tpu.memory_space<vmem>>, vector<128x128xbf16>,
    %c0_64 = arith.constant 0 : index
    %c2_65 = arith.constant 2 : index
    %c1_66 = arith.constant 1 : index
    %c0_67 = arith.constant 0 : index
    %47 = vector.load %arg10[%c0_64, %c2_65, %c1_66, %c0_67] : memref<2x10x10x128xf32, #tpu.memory_space<vmem>>, vector<2x8x8x128xf32>
    %48 = vector.shape_cast %47 : vector<2x8x8x128xf32> to vector<128x128xf32>
    %49 = arith.truncf %48 : vector<128x128xf32> to vector<128x128xbf16>
    %c0_68 = arith.constant 0 : index
    %c896 = arith.constant 896 : index
    %50 = vector.load %arg11[%c0_68, %c896] : memref<128x1152xbf16, #tpu.memory_space<vmem>>, vector<128x128xbf16>
    tpu.vector_store %arg11[%c0_68, %c896], %49 {strides = array<i32>} : memref<128x1152xbf16, #tpu.memory_space<vmem>>, vector<128x128xbf16>,
    %c0_69 = arith.constant 0 : index
    %c2_70 = arith.constant 2 : index
    %c2_71 = arith.constant 2 : index
    %c0_72 = arith.constant 0 : index
    %51 = vector.load %arg10[%c0_69, %c2_70, %c2_71, %c0_72] : memref<2x10x10x128xf32, #tpu.memory_space<vmem>>, vector<2x8x8x128xf32>
    %52 = vector.shape_cast %51 : vector<2x8x8x128xf32> to vector<128x128xf32>
    %53 = arith.truncf %52 : vector<128x128xf32> to vector<128x128xbf16>
    %c0_73 = arith.constant 0 : index
    %c1024 = arith.constant 1024 : index
    %54 = vector.load %arg11[%c0_73, %c1024] : memref<128x1152xbf16, #tpu.memory_space<vmem>>, vector<128x128xbf16>
    tpu.vector_store %arg11[%c0_73, %c1024], %53 {strides = array<i32>} : memref<128x1152xbf16, #tpu.memory_space<vmem>>, vector<128x128xbf16>,
    %c0_74 = arith.constant 0 : index
    %c0_75 = arith.constant 0 : index
    %c0_76 = arith.constant 0 : index
    %55 = vector.load %arg4[%c0_74, %c0_75, %c0_76] : memref<2x64x8xbf16, #tpu.memory_space<vmem>>, vector<2x64x8xbf16>
    %56 = vector.shape_cast %55 : vector<2x64x8xbf16> to vector<128x8xbf16>
    %c0_77 = arith.constant 0 : index
    %c0_78 = arith.constant 0 : index
    %57 = vector.load %arg5[%c0_77, %c0_78] : memref<8x128xbf16, #tpu.memory_space<vmem>>, vector<8x128xbf16>
    %cst_79 = arith.constant dense<0.000000e+00> : vector<128x128xf32>
    %58 = tpu.matmul %56, %57, %cst_79 {dimension_numbers = #tpu.dot_dimension_numbers<[1], [0], [0], [1], [0, 0, 1, 1], [], []>} : vector<128x8xbf16>, vector<8x128xbf16>, vector<128x128xf32> -> vector<128x128xf32>
    %c0_80 = arith.constant 0 : index
    %c0_81 = arith.constant 0 : index
    %59 = vector.load %arg6[%c0_80, %c0_81] : memref<1x128xf32, #tpu.memory_space<vmem>>, vector<1x128xf32>
    %60 = vector.broadcast %59 : vector<1x128xf32> to vector<128x128xf32>
    %61 = arith.addf %58, %60 : vector<128x128xf32>
    %c0_82 = arith.constant 0 : index
    %c0_83 = arith.constant 0 : index
    %62 = vector.load %arg11[%c0_82, %c0_83] : memref<128x1152xbf16, #tpu.memory_space<vmem>>, vector<128x1152xbf16>
    %c0_84 = arith.constant 0 : index
    %c0_85 = arith.constant 0 : index
    %63 = vector.load %arg7[%c0_84, %c0_85] : memref<1152x128xbf16, #tpu.memory_space<vmem>>, vector<1152x128xbf16>
    %cst_86 = arith.constant dense<0.000000e+00> : vector<128x128xf32>
    %64 = tpu.matmul %62, %63, %cst_86 {dimension_numbers = #tpu.dot_dimension_numbers<[1], [0], [0], [1], [0, 0, 1, 1], [], []>} : vector<128x1152xbf16>, vector<1152x128xbf16>, vector<128x128xf32> -> vector<128x128xf32>
    %c0_87 = arith.constant 0 : index
    %c0_88 = arith.constant 0 : index
    %65 = vector.load %arg8[%c0_87, %c0_88] : memref<1x128xf32, #tpu.memory_space<vmem>>, vector<1x128xf32>
    %66 = vector.broadcast %65 : vector<1x128xf32> to vector<128x128xf32>
    %67 = arith.addf %64, %66 : vector<128x128xf32>
    %68 = arith.addf %67, %61 : vector<128x128xf32>
    %cst_89 = arith.constant 0.000000e+00 : f32
    %69 = vector.broadcast %cst_89 : f32 to vector<128x128xf32>
    %70 = arith.maximumf %68, %69 : vector<128x128xf32>
    %71 = vector.shape_cast %70 : vector<128x128xf32> to vector<2x64x128xf32>
    %c0_90 = arith.constant 0 : index
    %c0_91 = arith.constant 0 : index
    %c0_92 = arith.constant 0 : index
    %72 = vector.load %arg9[%c0_90, %c0_91, %c0_92] : memref<2x64x128xf32, #tpu.memory_space<vmem>>, vector<2x64x128xf32>
    tpu.vector_store %arg9[%c0_90, %c0_91, %c0_92], %71 {strides = array<i32>} : memref<2x64x128xf32, #tpu.memory_space<vmem>>, vector<2x64x128xf32>,
    return
  }
  func.func @transform_0(%arg0: i32) -> (i32, i32, i32) {
    %c0_i32 = arith.constant 0 : i32
    %c0_i32_0 = arith.constant 0 : i32
    %c0_i32_1 = arith.constant 0 : i32
    return %arg0, %c0_i32, %c0_i32_0 : i32, i32, i32
  }
  func.func @transform_1(%arg0: i32) -> (i32, i32) {
    %c0_i32 = arith.constant 0 : i32
    %c0_i32_0 = arith.constant 0 : i32
    %c0_i32_1 = arith.constant 0 : i32
    return %c0_i32, %c0_i32_0 : i32, i32
  }
  func.func @transform_2(%arg0: i32) -> (i32, i32) {
    %c0_i32 = arith.constant 0 : i32
    %c0_i32_0 = arith.constant 0 : i32
    %c0_i32_1 = arith.constant 0 : i32
    return %c0_i32, %c0_i32_0 : i32, i32
  }
  func.func @transform_3(%arg0: i32) -> (i32, i32, i32) {
    %c0_i32 = arith.constant 0 : i32
    %c0_i32_0 = arith.constant 0 : i32
    %c0_i32_1 = arith.constant 0 : i32
    return %arg0, %c0_i32, %c0_i32_0 : i32, i32, i32
  }
  func.func @transform_4(%arg0: i32) -> (i32, i32) {
    %c0_i32 = arith.constant 0 : i32
    %c0_i32_0 = arith.constant 0 : i32
    %c0_i32_1 = arith.constant 0 : i32
    return %c0_i32, %c0_i32_0 : i32, i32
  }
  func.func @transform_5(%arg0: i32) -> (i32, i32) {
    %c0_i32 = arith.constant 0 : i32
    %c0_i32_0 = arith.constant 0 : i32
    %c0_i32_1 = arith.constant 0 : i32
    return %c0_i32, %c0_i32_0 : i32, i32
  }
  func.func @transform_6(%arg0: i32) -> (i32, i32) {
    %c0_i32 = arith.constant 0 : i32
    %c0_i32_0 = arith.constant 0 : i32
    %c0_i32_1 = arith.constant 0 : i32
    return %c0_i32, %c0_i32_0 : i32, i32
  }
  func.func @transform_7(%arg0: i32) -> (i32, i32) {
    %c0_i32 = arith.constant 0 : i32
    %c0_i32_0 = arith.constant 0 : i32
    %c0_i32_1 = arith.constant 0 : i32
    return %c0_i32, %c0_i32_0 : i32, i32
  }
  func.func @transform_8(%arg0: i32) -> (i32, i32, i32) {
    %c0_i32 = arith.constant 0 : i32
    %c0_i32_0 = arith.constant 0 : i32
    %c0_i32_1 = arith.constant 0 : i32
    return %arg0, %c0_i32, %c0_i32_0 : i32, i32, i32
  }
}

</mosaic_0001>

<bundles_post_ra>
// kernel: tpu_custom_call.1
= control target key start
LH: loop header
LB: loop body
LE: loop exit
PB: predicated region body
PF: predicated region fallthrough
CT: control target
= control target key end

     0   :  { %13 = vsyncpa [#allocation5], 0  ;;  %s3344_s0 = inlined_call_operand.vmem [shape: bf16[2,64,72], index: 0, kind: input, shape index: {}]   ;;  %s3345_s1 = inlined_call_operand.hbm [shape: bf16[72,128], index: 1, kind: input, shape index: {}]   ;;  %s3346_s2 = inlined_call_operand.vmem [shape: f32[1,128], index: 2, kind: input, shape index: {}]   ;;  %s3347_s3 = inlined_call_operand.vmem [shape: bf16[2,64,8], index: 3, kind: input, shape index: {}]   ;;  %s3348_s4 = inlined_call_operand.vmem [shape: bf16[8,128], index: 4, kind: input, shape index: {}]   ;;  %s3349_s5 = inlined_call_operand.vmem [shape: f32[1,128], index: 5, kind: input, shape index: {}]   ;;  %s3350_s6 = inlined_call_operand.hbm [shape: bf16[1152,128], index: 6, kind: input, shape index: {}]   ;;  %s3351_s7 = inlined_call_operand.vmem [shape: f32[1,128], index: 7, kind: input, shape index: {}]   ;;  %s3352_s8 = inlined_call_operand.hbm [shape: f32[2,64,128], index: 8, kind: output, shape index: {}]  }
   0x1   :  { %14 = vsyncpa [#allocation8], 0 }
   0x2   :  { %15 = vsyncpa [#allocation6], 0  ;;  %s2771_s27 = smov [#allocation4]   ;;  %s2699_s9 = scalar_lea.hbm %s3345_s1, 576 }
   0x3   :  { %s23_s28 = sshll.u32 %s2771_s27, 4  ;;  %p2700_p0 = scmp.ne.s32.totalorder %s3345_s1, %s2699_s9  ;;  %s24_s28 = int_to_ptr.vmem [resolvable:$true] %s23_s28 }
   0x4   :  { %p2703_p1 = scmp.lt.u32.totalorder %s2699_s9, %s3345_s1 }
   0x6   :  { %p2705_p2 = pnand %p2703_p1, %p2700_p0 }
   0x8   :  { %2708 = shalt.err (!%p2705_p2)
}
   0x9   :  { %s2709_s14 = scalar_lea.vmem %s24_s28, 576  ;;  %p2714_p4 = scmp.lt.s32.totalorder %s24_s28, %s24_s28 }
   0xa   :  { %p2710_p3 = scmp.ne.s32.totalorder %s24_s28, %s2709_s14  ;;  %p2715_p5 = scmp.lt.s32.totalorder %s2709_s14, %s2709_s14 }
   0xc   :  { %p2716_p6 = por %p2715_p5, %p2714_p4 }
   0xe   :  { %p2717_p7 = pnand %p2716_p6, %p2710_p3 }
  0x10   :  { %2720 = shalt.err (!%p2717_p7)
}
  0x11   :  { %s2772_s15 = smov 64   ;;  %s2773_s16 = smov 4  }
  0x12   :  { %29 = dma.hbm_to_vmem [thread:$0]  %s3345_s1, 576, %s24_s28, [#allocation5], %s2772_s15, %s2772_s15, %s2773_s16  }
  0x13   :  { %s2774_s19 = smov [#allocation7]   ;;  %s2721_s23 = scalar_lea.hbm %s3350_s6, 9216 }
  0x14   :  { %s43_s20 = sshll.u32 %s2774_s19, 4  ;;  %p2722_p8 = scmp.ne.s32.totalorder %s3350_s6, %s2721_s23  ;;  %s44_s20 = int_to_ptr.vmem [resolvable:$true] %s43_s20 }
  0x15   :  { %p2725_p9 = scmp.lt.u32.totalorder %s2721_s23, %s3350_s6 }
  0x17   :  { %p2727_p10 = pnand %p2725_p9, %p2722_p8 }
  0x19   :  { %2730 = shalt.err (!%p2727_p10)
}
  0x1a   :  { %s2731_s29 = scalar_lea.vmem %s44_s20, 9216  ;;  %p2736_p12 = scmp.lt.s32.totalorder %s44_s20, %s44_s20 }
  0x1b   :  { %p2732_p11 = scmp.ne.s32.totalorder %s44_s20, %s2731_s29  ;;  %p2737_p13 = scmp.lt.s32.totalorder %s2731_s29, %s2731_s29 }
  0x1d   :  { %p2738_p0 = por %p2737_p13, %p2736_p12 }
  0x1f   :  { %p2739_p1 = pnand %p2738_p0, %p2732_p11 }
  0x21   :  { %2742 = shalt.err (!%p2739_p1)
}
  0x22   :  { %49 = dma.hbm_to_vmem [thread:$0]  %s3350_s6, 9216, %s44_s20, [#allocation8], %s2772_s15, %s2772_s15, %s2773_s16  }
  0x23   :  { %2765 = dma.done.wait [#allocation5], 576  }
  0x24   :  { %2766 = vsyncadd [#allocation5], 4294966720 }
  0x25   :  { %2767 = dma.done.wait [#allocation8], 9216  }
  0x26   :  { %2768 = vsyncadd [#allocation8], 4294958080  ;;  %v2606_v0 = vld [vmem:[#allocation4] sm:$0xff]   ;;  %v2607_v1 = vld [vmem:[#allocation4 + $0x8] sm:$0xff]   ;;  %vm207_vm0 = vcmask 588800   ;;  %vm232_vm1 = vcmask 1043456  }
  0x27   :  { %2456 = vmatprep.subr.bf16.mxu0 %v2606_v0  ;;  %v2608_v2 = vld [vmem:[#allocation4 + $0x10] sm:$0xff]   ;;  %v2611_v3 = vld [vmem:[%s3344_s0] sm:$0xff]   ;;  %v2609_v4 = vld [vmem:[#allocation4 + $0x18] sm:$0xff]   ;;  %vm719_vm2 = vcmask 64512   ;;  %v2775_v39 = vmov 0.0  }
  0x28   :  { %2457 = vmatpush3.bf16.msra.mxu0 %v2606_v0  ;;  %2466 = vmatprep.mubr.msk.bf16.mxu0 %vm207_vm0, %v2611_v3  ;;  %v2610_v5 = vld [vmem:[#allocation4 + $0x20] ss:$0 sps:$4 sm:$0xff]   ;;  %v2620_v9 = vld [vmem:[%s3347_s3 + $0x8] sm:$0xff]   ;;  %v2613_v14 = vld [vmem:[%s3344_s0 + $0x10] sm:$0xff]   ;;  %59 = vst [vmem:[#allocation2] sm:$0xff] %v2775_v39 }
  0x29   :  { %2458 = vmatprep.subr.bf16.mxu0 %v2607_v1  ;;  %v671_v6 = vld [vmem:[%s3348_s4] sm:$0xf]  ;;  %v2621_v10 = vld [vmem:[#allocation7 + $0x40] sm:$0xff]   ;;  %v234_v11 = vsel %vm232_vm1, %v2610_v5, 0  ;;  %v2624_v16 = vld [vmem:[#allocation7 + $0x48] sm:$0xff]   ;;  %61 = vst [vmem:[#allocation2 + $0xa0] sm:$0xff] %v2775_v39 }
  0x2a   :  { %2597 = vmatprep.subr.msk.bf16.mxu1 %vm232_vm1, %v671_v6  ;;  %v745_v7 = vsel %vm232_vm1, %v671_v6, 0  ;;  %v2619_v8 = vld [vmem:[%s3347_s3] sm:$0xff]   ;;  %v2612_v12 = vld [vmem:[%s3344_s0 + $0x8] sm:$0xff]   ;;  %v2628_v20 = vld [vmem:[%s3347_s3 + $0x10] sm:$0xff]   ;;  %60 = vst [vmem:[#allocation2 + $0x8] sm:$0x3] %v2775_v39 }
  0x2b   :  { %2483 = vmatpush3.bf16.msra.mxu1 %v745_v7  ;;  %2484 = vmatprep.mubr.msk.bf16.mxu1 %vm719_vm2, %v2619_v8  ;;  %v2622_v13 = vld [vmem:[#allocation7] sm:$0xff]   ;;  %v2626_v18 = vld [vmem:[#allocation7 + $0x8] sm:$0xff]   ;;  %v2629_v21 = vld [vmem:[#allocation7 + $0x50] sm:$0xff]   ;;  %62 = vst [vmem:[#allocation2 + $0xa8] sm:$0x3] %v2775_v39 }
  0x2c   :  { %2459 = vmatpush3.bf16.msra.mxu0 %v2607_v1  ;;  %2184 = vmatprep.subr.bf16.mxu1 %v2621_v10  ;;  %v2623_v15 = vld [vmem:[#allocation7 + $0xc0] sm:$0xff]   ;;  %v2627_v19 = vld [vmem:[#allocation7 + $0xc8] sm:$0xff]   ;;  %v2614_v22 = vld [vmem:[%s3344_s0 + $0x18] sm:$0xff]   ;;  %64 = vst [vmem:[#allocation2 + $0x90] sm:$0xff] %v2775_v39 }
  0x2d   :  { %2460 = vmatprep.subr.bf16.mxu0 %v2608_v2  ;;  %v2625_v17 = vld [vmem:[#allocation7 + $0x80] sm:$0xff]   ;;  %v2630_v23 = vld [vmem:[#allocation7 + $0x88] sm:$0xff]   ;;  %v2631_v25 = vld [vmem:[%s3347_s3 + $0x18] sm:$0xff]   ;;  %65 = vst [vmem:[#allocation2 + $0x98] sm:$0x3] %v2775_v39 }
  0x2e   :  { %2485 = vmatmul.mubr.msk.bf16.vlgmr.msra.gmra.mrb[0].mxu1 %vm719_vm2, %v2620_v9  ;;  %v2615_v24 = vld [vmem:[%s3344_s0 + $0x20] sm:$0xff]   ;;  %v2632_v26 = vld [vmem:[#allocation7 + $0x10] sm:$0xff]   ;;  %v2616_v32 = vld [vmem:[%s3344_s0 + $0x28] sm:$0xff]   ;;  %66 = vst [vmem:[#allocation2 + $0x130] sm:$0xff] %v2775_v39 }
  0x2f   :  { %2185 = vmatpush3.bf16.msra.mxu1 %v2622_v13  ;;  %2488 = vmatprep.mubr.msk.bf16.mxu1 %vm719_vm2, %v2628_v20  ;;  %v2633_v27 = vld [vmem:[#allocation7 + $0xd0] sm:$0xff]   ;;  %v2634_v28 = vld [vmem:[#allocation7 + $0x58] sm:$0xff]   ;;  %v2641_v36 = vld [vmem:[%s3347_s3 + $0x28] sm:$0xff]   ;;  %67 = vst [vmem:[#allocation2 + $0x138] sm:$0x3] %v2775_v39 }
  0x30   :  { %2461 = vmatpush3.bf16.msra.mxu0 %v2608_v2  ;;  %2186 = vmatprep.subr.bf16.mxu1 %v2624_v16  ;;  %v2635_v29 = vld [vmem:[#allocation7 + $0x90] sm:$0xff]   ;;  %v2636_v30 = vld [vmem:[#allocation7 + $0x18] sm:$0xff]   ;;  %v2639_v37 = vld [vmem:[#allocation7 + $0x60] sm:$0xff]   ;;  %69 = vst [vmem:[#allocation2 + $0x10] sm:$0x1] %v2775_v39 }
  0x31   :  { %2462 = vmatprep.subr.bf16.mxu0 %v2609_v4  ;;  %v2637_v31 = vld [vmem:[#allocation7 + $0xd8] sm:$0xff]   ;;  %v2617_v33 = vld [vmem:[%s3344_s0 + $0x30] sm:$0xff]   ;;  %70 = vst [vmem:[#allocation2 + $0x20] sm:$0x1] %v2775_v39  ;;  %71 = vst [vmem:[#allocation2 + $0x30] sm:$0x1] %v2775_v39 }
  0x32   :  { %v2618_v34 = vld [vmem:[%s3344_s0 + $0x38] sm:$0xff]   ;;  %v2638_v35 = vld [vmem:[%s3347_s3 + $0x20] sm:$0xff]   ;;  %72 = vst [vmem:[#allocation2 + $0x40] sm:$0x1] %v2775_v39  ;;  %73 = vst [vmem:[#allocation2 + $0x50] sm:$0x1] %v2775_v39 }
  0x33   :  { %2187 = vmatpush3.bf16.msra.mxu1 %v2626_v18  ;;  %v2640_v38 = vld [vmem:[#allocation7 + $0x98] sm:$0xff]   ;;  %74 = vst [vmem:[#allocation2 + $0x60] sm:$0x1] %v2775_v39  ;;  %75 = vst [vmem:[#allocation2 + $0x70] sm:$0x1] %v2775_v39  ;;  %v2642_v40 = vld [vmem:[#allocation7 + $0x20] sm:$0xff]  }
  0x34   :  { %2463 = vmatpush3.bf16.msra.mxu0 %v2609_v4  ;;  %2188 = vmatprep.subr.bf16.mxu1 %v2629_v21  ;;  %76 = vst [vmem:[#allocation2 + $0x80] sm:$0x1] %v2775_v39  ;;  %79 = vst [vmem:[#allocation2 + $0xb0] sm:$0x1] %v2775_v39  ;;  %v2643_v41 = vld [vmem:[#allocation7 + $0xe0] sm:$0xff]   ;;  %v2644_v42 = vld [vmem:[#allocation7 + $0x68] sm:$0xff]  }
  0x35   :  { %2596 = vmatprep.subr.msk.bf16.mxu0 %vm232_vm1, %v2610_v5  ;;  %80 = vst [vmem:[#allocation2 + $0xc0] sm:$0x1] %v2775_v39  ;;  %81 = vst [vmem:[#allocation2 + $0xd0] sm:$0x1] %v2775_v39  ;;  %v2645_v43 = vld [vmem:[#allocation7 + $0xa0] sm:$0xff]   ;;  %v2646_v44 = vld [vmem:[#allocation7 + $0x28] sm:$0xff]  }
  0x36   :  { %2489 = vmatmul.mubr.msk.bf16.gmra.mrb[4].mxu1 %vm719_vm2, %v2631_v25  ;;  %82 = vst [vmem:[#allocation2 + $0xe0] sm:$0x1] %v2775_v39  ;;  %83 = vst [vmem:[#allocation2 + $0xf0] sm:$0x1] %v2775_v39  ;;  %v2648_v45 = vld [vmem:[%s3347_s3 + $0x30] sm:$0xff]   ;;  %v2651_v47 = vld [vmem:[%s3347_s3 + $0x38] sm:$0xff]  }
  0x37   :  { %2189 = vmatpush3.bf16.msra.mxu1 %v2632_v26  ;;  %2492 = vmatprep.mubr.msk.bf16.mxu1 %vm719_vm2, %v2638_v35  ;;  %84 = vst [vmem:[#allocation2 + $0x100] sm:$0x1] %v2775_v39  ;;  %85 = vst [vmem:[#allocation2 + $0x110] sm:$0x1] %v2775_v39  ;;  %v2647_v46 = vld [vmem:[#allocation7 + $0xe8] sm:$0xff]   ;;  %v2649_v48 = vld [vmem:[#allocation7 + $0x70] sm:$0xff]  }
  0x38   :  { %2465 = vmatpush3.bf16.msra.mxu0 %v234_v11  ;;  %2190 = vmatprep.subr.bf16.mxu1 %v2634_v28  ;;  %86 = vst [vmem:[#allocation2 + $0x120] sm:$0x1] %v2775_v39  ;;  %89 = vst [vmem:[#allocation2 + $0x19] sm:$0x1] %v2775_v39  ;;  %v2650_v49 = vld [vmem:[#allocation7 + $0xa8] sm:$0xff]   ;;  %v2652_v50 = vld [vmem:[#allocation7 + $0x30] sm:$0xff]  }
  0x39   :  { %2248 = vmatprep.subr.bf16.mxu0 %v2623_v15  ;;  %90 = vst [vmem:[#allocation2 + $0x29] sm:$0x1] %v2775_v39  ;;  %91 = vst [vmem:[#allocation2 + $0x39] sm:$0x1] %v2775_v39  ;;  %v2653_v51 = vld [vmem:[#allocation7 + $0xf0] sm:$0xff]   ;;  %v2654_v52 = vld [vmem:[#allocation7 + $0x78] sm:$0xff]  }
  0x3a   :  { %92 = vst [vmem:[#allocation2 + $0x49] sm:$0x1] %v2775_v39  ;;  %93 = vst [vmem:[#allocation2 + $0x59] sm:$0x1] %v2775_v39  ;;  %v2655_v53 = vld [vmem:[#allocation7 + $0xb0] sm:$0xff]   ;;  %v2656_v54 = vld [vmem:[#allocation7 + $0x38] sm:$0xff]  }
  0x3b   :  { %2467 = vmatmul.mubr.msk.bf16.vlgmr.msra.gmra.mrb[0].mxu0 %vm207_vm0, %v2612_v12  ;;  %2191 = vmatpush3.bf16.msra.mxu1 %v2636_v30  ;;  %94 = vst [vmem:[#allocation2 + $0x69] sm:$0x1] %v2775_v39  ;;  %95 = vst [vmem:[#allocation2 + $0x79] sm:$0x1] %v2775_v39  ;;  %v2657_v55 = vld [vmem:[#allocation7 + $0xf8] sm:$0xff]   ;;  %v2659_v57 = vld [vmem:[#allocation7 + $0x140] sm:$0xff]  }
  0x3c   :  { %2470 = vmatprep.mubr.msk.bf16.mxu0 %vm207_vm0, %v2613_v14  ;;  %2249 = vmatpush3.bf16.msra.mxu0 %v2625_v17  ;;  %96 = vst [vmem:[#allocation2 + $0x89] sm:$0x1] %v2775_v39  ;;  %99 = vst [vmem:[#allocation2 + $0xb9] sm:$0x1] %v2775_v39  ;;  %v2658_v56 = vld [vmem:[#allocation7 + $0xb8] sm:$0xff]   ;;  %v2664_v58 = vld [vmem:[#allocation7 + $0x1c0] sm:$0xff]  }
  0x3d   :  { %2250 = vmatprep.subr.bf16.mxu0 %v2627_v19  ;;  %100 = vst [vmem:[#allocation2 + $0xc9] sm:$0x1] %v2775_v39  ;;  %101 = vst [vmem:[#allocation2 + $0xd9] sm:$0x1] %v2775_v39  ;;  %2192 = vmatprep.subr.bf16.mxu1 %v2639_v37  ;;  %v2918_v59 = vld [vmem:[%s3346_s2] ss:$0 sm:$0xff] }
  0x3e   :  { %102 = vst [vmem:[#allocation2 + $0xe9] sm:$0x1] %v2775_v39  ;;  %103 = vst [vmem:[#allocation2 + $0xf9] sm:$0x1] %v2775_v39  ;;  %2493 = vmatmul.mubr.msk.bf16.gmra.mrb[8].mxu1 %vm719_vm2, %v2641_v36  ;;  %v398_v4 = vld [vmem:[#allocation2 + $0x1] sm:$0xff] }
  0x3f   :  { %104 = vst [vmem:[#allocation2 + $0x109] sm:$0x1] %v2775_v39  ;;  %105 = vst [vmem:[#allocation2 + $0x119] sm:$0x1] %v2775_v39  ;;  %2193 = vmatpush3.bf16.msra.mxu1 %v2642_v40  ;;  %2496 = vmatprep.mubr.msk.bf16.mxu1 %vm719_vm2, %v2648_v45  ;;  %v2660_v26 = vld [vmem:[#allocation7 + $0x100] sm:$0xff]   ;;  %v2668_v45 = vld [vmem:[#allocation7 + $0x1c8] sm:$0xff]  }
  0x40   :  { %2251 = vmatpush3.bf16.msra.mxu0 %v2630_v23  ;;  %106 = vst [vmem:[#allocation2 + $0x129] sm:$0x1] %v2775_v39  ;;  %68 = vst [vmem:[#allocation2] sm:$0x1] %v2775_v39  ;;  %2194 = vmatprep.subr.bf16.mxu1 %v2644_v42  ;;  %v2662_v42 = vld [vmem:[#allocation7 + $0x108] sm:$0xff]  }
  0x41   :  { %2252 = vmatprep.subr.bf16.mxu0 %v2633_v27  ;;  %88 = vst [vmem:[#allocation2 + $0x9] sm:$0x1] %v2775_v39  ;;  %77 = vst [vmem:[#allocation2 + $0x90] sm:$0x1] %v2775_v39 }
  0x42   :  { %78 = vst [vmem:[#allocation2 + $0xa0] sm:$0x1] %v2775_v39  ;;  %87 = vst [vmem:[#allocation2 + $0x130] sm:$0x1] %v2775_v39 }
  0x43   :  { %2471 = vmatmul.mubr.msk.bf16.gmra.mrb[4].mxu0 %vm207_vm0, %v2614_v22  ;;  %97 = vst [vmem:[#allocation2 + $0x99] sm:$0x1] %v2775_v39  ;;  %98 = vst [vmem:[#allocation2 + $0xa9] sm:$0x1] %v2775_v39  ;;  %2195 = vmatpush3.bf16.msra.mxu1 %v2646_v44 }
  0x44   :  { %2474 = vmatprep.mubr.msk.bf16.mxu0 %vm207_vm0, %v2615_v24  ;;  %2253 = vmatpush3.bf16.msra.mxu0 %v2635_v29  ;;  %107 = vst [vmem:[#allocation2 + $0x139] sm:$0x1] %v2775_v39 }
  0x45   :  { %2254 = vmatprep.subr.bf16.mxu0 %v2637_v31  ;;  %2196 = vmatprep.subr.bf16.mxu1 %v2649_v48  ;;  %v2661_v31 = vld [vmem:[#allocation7 + $0x148] sm:$0xff]  }
  0x46   :  { %2497 = vmatmul.mubr.msk.bf16.gmra.mrb[12].mxu1 %vm719_vm2, %v2651_v47 }
  0x47   :  { %2197 = vmatpush3.bf16.msra.mxu1 %v2652_v50  ;;  %v366_v21 = vld [vmem:[#allocation2] sm:$0xff]  ;;  %v2663_v50 = vld [vmem:[#allocation7 + $0x150] sm:$0xff]  }
  0x48   :  { %2255 = vmatpush3.bf16.msra.mxu0 %v2640_v38  ;;  %2198 = vmatprep.subr.bf16.mxu1 %v2654_v52  ;;  %v430_v29 = vld [vmem:[#allocation2 + $0x2] sm:$0xff] }
  0x49   :  { %2256 = vmatprep.subr.bf16.mxu0 %v2643_v41  ;;  %v2666_v38 = vld [vmem:[#allocation7 + $0x180] sm:$0xff]  }
  0x4b   :  { %2475 = vmatmul.mubr.msk.bf16.gmra.mrb[8].mxu0 %vm207_vm0, %v2616_v32  ;;  %2199 = vmatpush3.bf16.msra.mxu1 %v2656_v54 }
  0x4c   :  { %2478 = vmatprep.mubr.msk.bf16.mxu0 %vm207_vm0, %v2617_v33  ;;  %2257 = vmatpush3.bf16.msra.mxu0 %v2645_v43 }
  0x4d   :  { %2258 = vmatprep.subr.bf16.mxu0 %v2647_v46  ;;  %2312 = vmatprep.subr.bf16.mxu1 %v2659_v57 }
  0x50   :  { %2259 = vmatpush3.bf16.msra.mxu0 %v2650_v49 }
  0x51   :  { %2260 = vmatprep.subr.bf16.mxu0 %v2653_v51 }
  0x53   :  { %2479 = vmatmul.mubr.msk.bf16.gmra.mrb[12].mxu0 %vm207_vm0, %v2618_v34 }
  0x54   :  { %2261 = vmatpush3.bf16.msra.mxu0 %v2655_v53 }
  0x55   :  { %2262 = vmatprep.subr.bf16.mxu0 %v2657_v55 }
  0x58   :  { %2263 = vmatpush3.bf16.msra.mxu0 %v2658_v56  ;;  %v2670_v56 = vld [vmem:[#allocation7 + $0x188] sm:$0xff]  }
  0x59   :  { %2376 = vmatprep.subr.bf16.mxu0 %v2664_v58  ;;  %v2665_v58 = vld [vmem:[#allocation7 + $0x110] sm:$0xff]  }
 0x10e   :  { %v2468_v60 = vpop.f32.mrb[0].mxu0 }
 0x10f   :  { %v279_v61 = vadd.f32 %v2468_v60, %v2918_v59  ;;  %v270_v62 = vpop.f32.mrb[1].mxu0 }
 0x110   :  { %v271_v63 = vadd.f32 %v2918_v59, %v270_v62  ;;  %v2469_v0 = vpop.f32.mrb[2].mxu0 }
 0x111   :  { %v2922_v1 = vmax.f32 %v279_v61, 0.0  ;;  %v282_v2 = vadd.f32 %v2469_v0, %v2918_v59  ;;  %v273_v3 = vpop.f32.mrb[3].mxu0  ;;  %v2672_v0 = vld [vmem:[#allocation7 + $0x1d0] sm:$0xff]  }
 0x112   :  { %v2925_v5 = vmax.f32 %v271_v63, 0.0  ;;  %v274_v6 = vadd.f32 %v2918_v59, %v273_v3  ;;  %v2667_v63 = vld [vmem:[#allocation7 + $0x158] sm:$0xff]  }
 0x113   :  { %352 = vst [vmem:[#allocation2 + $0x31] sm:$0xff] %v2922_v1  ;;  %v2929_v7 = vmax.f32 %v282_v2, 0.0 }
 0x114   :  { %350 = vst [vmem:[#allocation2 + $0x11] sm:$0xff] %v2925_v5  ;;  %v2932_v8 = vmax.f32 %v274_v6, 0.0  ;;  %v414_v9 = vpack.c.bf16 %v2925_v5, %v398_v4 }
 0x115   :  { %353 = vst [vmem:[#allocation2 + $0x41] sm:$0xff] %v2929_v7  ;;  %v511_v10 = vpack.c.bf16 %v2929_v7, %v2922_v1 }
 0x116   :  { %351 = vst [vmem:[#allocation2 + $0x21] sm:$0xff] %v2932_v8  ;;  %v2472_v11 = vpop.f32.mrb[4].mxu0  ;;  %1531 = vmatprep.mubr.bf16.mxu1 %v414_v9  ;;  %v2941_v12 = vpack.c.bf16 %v2922_v1, %v2932_v8  ;;  %v510_v13 = vpack.c.bf16 %v2932_v8, %v2925_v5  ;;  %v2695_v5 = vld [vmem:[#allocation7 + $0x220] sm:$0xff]  }
 0x117   :  { %v295_v14 = vadd.f32 %v2472_v11, %v2918_v59  ;;  %v286_v15 = vpop.f32.mrb[5].mxu0 }
 0x118   :  { %v287_v16 = vadd.f32 %v2918_v59, %v286_v15  ;;  %v2473_v17 = vpop.f32.mrb[6].mxu0 }
 0x119   :  { %v2947_v18 = vmax.f32 %v295_v14, 0.0  ;;  %v298_v19 = vadd.f32 %v2473_v17, %v2918_v59  ;;  %v289_v20 = vpop.f32.mrb[7].mxu0  ;;  %v2674_v14 = vld [vmem:[#allocation7 + $0x190] sm:$0xff]  }
 0x11a   :  { %v2950_v22 = vmax.f32 %v287_v16, 0.0  ;;  %v290_v23 = vadd.f32 %v2918_v59, %v289_v20  ;;  %v464_v41 = vld [vmem:[#allocation2 + $0x30] sm:$0xff] }
 0x11b   :  { %356 = vst [vmem:[#allocation2 + $0x71] sm:$0xff] %v2947_v18  ;;  %v2954_v24 = vmax.f32 %v298_v19, 0.0  ;;  %v367_v25 = vld [vmem:[#allocation2 + $0x10] sm:$0xff]  ;;  %v2669_v19 = vld [vmem:[#allocation7 + $0x118] sm:$0xff]  }
 0x11c   :  { %354 = vst [vmem:[#allocation2 + $0x51] sm:$0xff] %v2950_v22  ;;  %v2957_v27 = vmax.f32 %v290_v23, 0.0  ;;  %v382_v28 = vpack.c.bf16 %v367_v25, %v366_v21  ;;  %v2959_v30 = vld [vmem:[#allocation2 + $0x12] sm:$0xff]  ;;  %v2963_v32 = vpack.c.bf16 %v2950_v22, %v2929_v7  ;;  %v2966_v34 = vld [vmem:[#allocation2 + $0x40] sm:$0xff] }
 0x11d   :  { %357 = vst [vmem:[#allocation2 + $0x81] sm:$0xff] %v2954_v24  ;;  %v463_v33 = vld [vmem:[#allocation2 + $0x20] sm:$0xff]  ;;  %v513_v35 = vpack.c.bf16 %v2954_v24, %v2947_v18  ;;  %v446_v40 = vpack.c.bf16 %v2959_v30, %v430_v29  ;;  %v479_v47 = vpack.c.bf16 %v2966_v34, %v464_v41  ;;  %v3004_v6 = vld [vmem:[#allocation2 + $0x32] sm:$0xff] }
 0x11e   :  { %355 = vst [vmem:[#allocation2 + $0x61] sm:$0xff] %v2957_v27  ;;  %1532 = vmatmul.mubr.bf16.vlgmr.msra.gmra.mrb[16].mxu1 %v382_v28  ;;  %v478_v36 = vpack.c.bf16 %v463_v33, %v367_v25  ;;  %v2476_v37 = vpop.f32.mrb[8].mxu0  ;;  %v2973_v39 = vpack.c.bf16 %v2947_v18, %v2957_v27  ;;  %v512_v46 = vpack.c.bf16 %v2957_v27, %v2950_v22  ;;  %v2993_v61 = vld [vmem:[#allocation2 + $0x22] sm:$0xff]  ;;  %v598_v7 = vld [vmem:[#allocation2 + $0x91] sm:$0xff] }
 0x11f   :  { %2313 = vmatpush3.bf16.msra.mxu1 %v2660_v26  ;;  %1539 = vmatprep.mubr.bf16.mxu1 %v2941_v12  ;;  %v311_v43 = vadd.f32 %v2476_v37, %v2918_v59  ;;  %v302_v44 = vpop.f32.mrb[9].mxu0  ;;  %v2991_v60 = vpack.c.bf16 %v464_v41, %v463_v33  ;;  %v3011_v15 = vpack.c.bf16 %v3004_v6, %v2993_v61  ;;  %v2676_v21 = vld [vmem:[#allocation7 + $0x1d8] sm:$0xff]   ;;  %v2671_v26 = vld [vmem:[#allocation7 + $0x160] sm:$0xff]  }
 0x120   :  { %1628 = vmatprep.mubr.bf16.mxu0 %v478_v36  ;;  %2314 = vmatprep.subr.bf16.mxu1 %v2661_v31  ;;  %v303_v48 = vadd.f32 %v2918_v59, %v302_v44  ;;  %v2477_v49 = vpop.f32.mrb[10].mxu0  ;;  %v2673_v41 = vld [vmem:[#allocation7 + $0x120] sm:$0xff]  }
 0x121   :  { %1629 = vmatmul.mubr.bf16.vlgmr.msra.gmra.mrb[16].mxu0 %v446_v40  ;;  %v2982_v51 = vmax.f32 %v311_v43, 0.0  ;;  %v314_v52 = vadd.f32 %v2477_v49, %v2918_v59  ;;  %v305_v53 = vpop.f32.mrb[11].mxu0 }
 0x122   :  { %1636 = vmatprep.mubr.bf16.mxu0 %v479_v47  ;;  %v2985_v54 = vmax.f32 %v303_v48, 0.0  ;;  %v306_v55 = vadd.f32 %v2918_v59, %v305_v53  ;;  %2377 = vmatpush3.bf16.msra.mxu0 %v2666_v38  ;;  %v2678_v38 = vld [vmem:[#allocation7 + $0x198] sm:$0xff]   ;;  %v2680_v47 = vld [vmem:[#allocation7 + $0x1e0] sm:$0xff]   ;;  %v468_v48 = vld [vmem:[#allocation2 + $0x70] sm:$0xff]  ;;  %v3052_v53 = vpop.f32.mrb[0].mxu1 }
 0x123   :  { %2315 = vmatpush3.bf16.msra.mxu1 %v2662_v42  ;;  %360 = vst [vmem:[#allocation2 + $0xd1] sm:$0xff] %v2982_v51  ;;  %v2989_v57 = vmax.f32 %v314_v52, 0.0  ;;  %2378 = vmatprep.subr.bf16.mxu0 %v2668_v45  ;;  %v466_v2 = vld [vmem:[#allocation2 + $0x50] sm:$0xff]  ;;  %v2682_v52 = vld [vmem:[#allocation7 + $0x1a0] sm:$0xff]  }
 0x124   :  { %358 = vst [vmem:[#allocation2 + $0xb1] sm:$0xff] %v2985_v54  ;;  %v2996_v62 = vmax.f32 %v306_v55, 0.0  ;;  %2316 = vmatprep.subr.bf16.mxu1 %v2663_v50  ;;  %v3033_v42 = vpack.c.bf16 %v466_v2, %v2966_v34  ;;  %v3035_v43 = vld [vmem:[#allocation2 + $0x52] sm:$0xff]  ;;  %v3043_v49 = vld [vmem:[#allocation2 + $0x80] sm:$0xff] }
 0x125   :  { %361 = vst [vmem:[#allocation2 + $0xe1] sm:$0xff] %v2989_v57  ;;  %v2999_v3 = vld [vmem:[#allocation2 + $0x60] sm:$0xff] }
 0x126   :  { %1540 = vmatmul.mubr.bf16.gmra.mrb[20].mxu1 %v2991_v60  ;;  %359 = vst [vmem:[#allocation2 + $0xc1] sm:$0xff] %v2996_v62  ;;  %v2480_v9 = vpop.f32.mrb[12].mxu0  ;;  %v480_v11 = vpack.c.bf16 %v2999_v3, %v466_v2  ;;  %2379 = vmatpush3.bf16.msra.mxu0 %v2670_v56  ;;  %v3016_v20 = vpack.c.bf16 %v2982_v51, %v2996_v62  ;;  %v3049_v50 = vld [vmem:[#allocation2 + $0x42] sm:$0xff]  ;;  %v2677_v56 = vld [vmem:[#allocation7 + $0x128] sm:$0xff]   ;;  %v3065_v2 = vpop.f32.mrb[1].mxu1 }
 0x127   :  { %1547 = vmatprep.mubr.bf16.mxu1 %v2963_v32  ;;  %v327_v16 = vadd.f32 %v2480_v9, %v2918_v59  ;;  %v318_v17 = vpop.f32.mrb[13].mxu0  ;;  %2317 = vmatpush3.bf16.msra.mxu1 %v2665_v58  ;;  %v514_v28 = vpack.c.bf16 %v2996_v62, %v2985_v54  ;;  %v3057_v55 = vpack.c.bf16 %v3035_v43, %v3049_v50  ;;  %v3149_v8 = vld [vmem:[#allocation2 + $0x82] sm:$0xff]  ;;  %v606_v62 = vld [vmem:[#allocation2 + $0x131] sm:$0xff] }
 0x128   :  { %v319_v23 = vadd.f32 %v2918_v59, %v318_v17  ;;  %2318 = vmatprep.subr.bf16.mxu1 %v2667_v63  ;;  %v2481_v25 = vpop.f32.mrb[14].mxu0  ;;  %2380 = vmatprep.subr.bf16.mxu0 %v2672_v0  ;;  %v2683_v63 = vld [vmem:[#allocation7 + $0x1e8] sm:$0xff]   ;;  %v481_v9 = vpack.c.bf16 %v3043_v49, %v468_v48  ;;  %v406_v17 = vld [vmem:[#allocation2 + $0xa1] sm:$0xff]  ;;  %v542_v0 = vpack.c.bf16 %v2993_v61, %v2959_v30  ;;  %v2693_v30 = vld [vmem:[#allocation7 + $0x210] sm:$0xff]  }
 0x129   :  { %1637 = vmatmul.mubr.bf16.gmra.mrb[20].mxu0 %v3011_v15  ;;  %v3022_v29 = vmax.f32 %v327_v16, 0.0  ;;  %v330_v31 = vadd.f32 %v2481_v25, %v2918_v59  ;;  %v321_v33 = vpop.f32.mrb[15].mxu0 }
 0x12a   :  { %1644 = vmatprep.mubr.bf16.mxu0 %v480_v11  ;;  %v3025_v36 = vmax.f32 %v319_v23, 0.0  ;;  %v322_v37 = vadd.f32 %v2918_v59, %v321_v33  ;;  %2381 = vmatpush3.bf16.msra.mxu0 %v2674_v14  ;;  %v2675_v59 = vld [vmem:[#allocation7 + $0x168] sm:$0xff]   ;;  %v2679_v11 = vld [vmem:[#allocation7 + $0x170] sm:$0xff]   ;;  %v3068_v14 = vpop.f32.mrb[2].mxu1  ;;  %v3076_v33 = vld [vmem:[#allocation2 + $0x62] sm:$0xff] }
 0x12b   :  { %364 = vst [vmem:[#allocation2 + $0x111] sm:$0xff] %v3022_v29  ;;  %2319 = vmatpush3.bf16.msra.mxu1 %v2669_v19  ;;  %v3029_v40 = vmax.f32 %v330_v31, 0.0  ;;  %2382 = vmatprep.subr.bf16.mxu0 %v2676_v21  ;;  %v3071_v16 = vpop.f32.mrb[3].mxu1  ;;  %v2681_v19 = vld [vmem:[#allocation7 + $0x130] sm:$0xff]   ;;  %v2685_v21 = vld [vmem:[#allocation7 + $0x1a8] sm:$0xff]   ;;  %v3074_v31 = vpack.c.bf16 %v468_v48, %v2999_v3  ;;  %v374_v3 = vld [vmem:[#allocation2 + $0xa0] sm:$0xff]  ;;  %v544_v61 = vpack.c.bf16 %v3076_v33, %v3035_v43 }
 0x12c   :  { %362 = vst [vmem:[#allocation2 + $0xf1] sm:$0xff] %v3025_v36  ;;  %v3037_v44 = vmax.f32 %v322_v37, 0.0  ;;  %2320 = vmatprep.subr.bf16.mxu1 %v2671_v26  ;;  %v3041_v45 = vpack.c.bf16 %v3025_v36, %v2989_v57  ;;  %v470_v23 = vld [vmem:[#allocation2 + $0xb0] sm:$0xff]  ;;  %v2684_v26 = vld [vmem:[#allocation7 + $0x178] sm:$0xff]  }
 0x12d   :  { %365 = vst [vmem:[#allocation2 + $0x121] sm:$0xff] %v3029_v40  ;;  %v471_v25 = vld [vmem:[#allocation2 + $0xc0] sm:$0xff]  ;;  %v3078_v37 = vld [vmem:[#allocation2 + $0x72] sm:$0xff] }
 0x12e   :  { %1548 = vmatmul.mubr.bf16.gmra.mrb[24].mxu1 %v3033_v42  ;;  %363 = vst [vmem:[#allocation2 + $0x101] sm:$0xff] %v3037_v44  ;;  %2383 = vmatpush3.bf16.msra.mxu0 %v2678_v38  ;;  %v3061_v58 = vpack.c.bf16 %v3022_v29, %v3037_v44  ;;  %v2687_v38 = vld [vmem:[#allocation7 + $0x1f0] sm:$0xff]   ;;  %v2686_v48 = vld [vmem:[#allocation7 + $0x138] sm:$0xff]   ;;  %v545_v1 = vpack.c.bf16 %v3149_v8, %v3078_v37 }
 0x12f   :  { %1555 = vmatprep.mubr.bf16.mxu1 %v2973_v39  ;;  %2321 = vmatpush3.bf16.msra.mxu1 %v2673_v41  ;;  %v418_v41 = vpack.c.bf16 %v2985_v54, %v406_v17  ;;  %v438_v17 = vld [vmem:[#allocation2 + $0xa2] sm:$0xff] }
 0x130   :  { %2322 = vmatprep.subr.bf16.mxu1 %v2675_v59  ;;  %2384 = vmatprep.subr.bf16.mxu0 %v2680_v47  ;;  %v482_v59 = vpack.c.bf16 %v471_v25, %v470_v23  ;;  %v2688_v47 = vld [vmem:[#allocation7 + $0x1b0] sm:$0xff]   ;;  %v473_v34 = vld [vmem:[#allocation2 + $0xe0] sm:$0xff] }
 0x131   :  { %1645 = vmatmul.mubr.bf16.gmra.mrb[24].mxu0 %v3057_v55 }
 0x132   :  { %1652 = vmatprep.mubr.bf16.mxu0 %v481_v9  ;;  %2385 = vmatpush3.bf16.msra.mxu0 %v2682_v52  ;;  %v3084_v52 = vpack.c.bf16 %v3078_v37, %v3076_v33  ;;  %v386_v9 = vpack.c.bf16 %v470_v23, %v374_v3 }
 0x133   :  { %2323 = vmatpush3.bf16.msra.mxu1 %v2677_v56  ;;  %2386 = vmatprep.subr.bf16.mxu0 %v2683_v63  ;;  %v2689_v56 = vld [vmem:[#allocation7 + $0x1f8] sm:$0xff]   ;;  %v2691_v63 = vld [vmem:[#allocation7 + $0x200] sm:$0xff]   ;;  %v474_v3 = vld [vmem:[#allocation2 + $0xf0] sm:$0xff] }
 0x134   :  { %2324 = vmatprep.subr.bf16.mxu1 %v2679_v11  ;;  %v2690_v11 = vld [vmem:[#allocation7 + $0x1b8] sm:$0xff]  }
 0x135   :  { %v475_v23 = vld [vmem:[#allocation2 + $0x100] sm:$0xff] }
 0x136   :  { %1556 = vmatmul.mubr.bf16.gmra.mrb[28].mxu1 %v3074_v31  ;;  %2387 = vmatpush3.bf16.msra.mxu0 %v2685_v21  ;;  %v3087_v21 = vld [vmem:[#allocation2 + $0xb2] sm:$0xff] }
 0x137   :  { %1563 = vmatprep.mubr.bf16.mxu1 %v418_v41  ;;  %2325 = vmatpush3.bf16.msra.mxu1 %v2681_v19  ;;  %v472_v41 = vld [vmem:[#allocation2 + $0xd0] sm:$0xff]  ;;  %v450_v19 = vpack.c.bf16 %v3087_v21, %v438_v17 }
 0x138   :  { %2326 = vmatprep.subr.bf16.mxu1 %v2684_v26  ;;  %2388 = vmatprep.subr.bf16.mxu0 %v2687_v38  ;;  %v483_v26 = vpack.c.bf16 %v473_v34, %v472_v41  ;;  %v3091_v38 = vpack.c.bf16 %v472_v41, %v471_v25  ;;  %v3106_v25 = vld [vmem:[#allocation2 + $0xe2] sm:$0xff]  ;;  %v476_v17 = vld [vmem:[#allocation2 + $0x110] sm:$0xff] }
 0x139   :  { %1653 = vmatmul.mubr.bf16.gmra.mrb[28].mxu0 %v3084_v52  ;;  %v3110_v41 = vld [vmem:[#allocation2 + $0x120] sm:$0xff] }
 0x13a   :  { %1660 = vmatprep.mubr.bf16.mxu0 %v482_v59  ;;  %2389 = vmatpush3.bf16.msra.mxu0 %v2688_v47  ;;  %v3093_v59 = vld [vmem:[#allocation2 + $0xc2] sm:$0xff]  ;;  %v3095_v47 = vld [vmem:[#allocation2 + $0xd2] sm:$0xff] }
 0x13b   :  { %2327 = vmatpush3.bf16.msra.mxu1 %v2686_v48  ;;  %2390 = vmatprep.subr.bf16.mxu0 %v2689_v56  ;;  %v484_v48 = vpack.c.bf16 %v475_v23, %v474_v3  ;;  %v3101_v56 = vpack.c.bf16 %v3095_v47, %v3093_v59  ;;  %v546_v22 = vpack.c.bf16 %v3093_v59, %v3087_v21 }
 0x13c   :  { %2532 = vmatprep.subr.bf16.mxu1 %v2691_v63 }
 0x13e   :  { %1564 = vmatmul.mubr.bf16.gmra.mrb[32].mxu1 %v386_v9  ;;  %2391 = vmatpush3.bf16.msra.mxu0 %v2690_v11  ;;  %v3104_v9 = vpack.c.bf16 %v474_v3, %v473_v34  ;;  %v3108_v11 = vld [vmem:[#allocation2 + $0xf2] sm:$0xff]  ;;  %v3120_v34 = vpack.c.bf16 %v476_v17, %v475_v23  ;;  %v3122_v3 = vld [vmem:[#allocation2 + $0x102] sm:$0xff] }
 0x13f   :  { %1571 = vmatprep.mubr.bf16.mxu1 %v3016_v20  ;;  %2500 = vmatprep.subr.bf16.mxu0 %v2691_v63  ;;  %v2692_v23 = vld [vmem:[#allocation7 + $0x208] sm:$0xff]   ;;  %v548_v18 = vpack.c.bf16 %v3122_v3, %v3108_v11 }
 0x141   :  { %1661 = vmatmul.mubr.bf16.gmra.mrb[32].mxu0 %v450_v19  ;;  %v3116_v19 = vpack.c.bf16 %v3108_v11, %v3106_v25 }
 0x142   :  { %1668 = vmatprep.mubr.bf16.mxu0 %v483_v26  ;;  %v485_v26 = vpack.c.bf16 %v3110_v41, %v476_v17  ;;  %v543_v17 = vpack.c.bf16 %v3049_v50, %v3004_v6  ;;  %v3354_v6 = vpack.c.bf16 %v3037_v44, %v3025_v36  ;;  %v3199_v44 = vld [vmem:[%s3351_s7] ss:$0 sm:$0xff] }
 0x146   :  { %1572 = vmatmul.mubr.bf16.gmra.mrb[36].mxu1 %v3091_v38 }
 0x147   :  { %1579 = vmatprep.mubr.bf16.mxu1 %v3041_v45 }
 0x149   :  { %1669 = vmatmul.mubr.bf16.gmra.mrb[36].mxu0 %v3101_v56 }
 0x14a   :  { %1676 = vmatprep.mubr.bf16.mxu0 %v484_v48  ;;  %v3124_v48 = vld [vmem:[#allocation2 + $0x112] sm:$0xff] }
 0x14b   :  { %v3131_v4 = vpack.c.bf16 %v3124_v48, %v3122_v3 }
 0x14e   :  { %1580 = vmatmul.mubr.bf16.gmra.mrb[40].mxu1 %v3104_v9 }
 0x14f   :  { %1587 = vmatprep.mubr.bf16.mxu1 %v3061_v58 }
 0x151   :  { %1677 = vmatmul.mubr.bf16.gmra.mrb[40].mxu0 %v3116_v19 }
 0x152   :  { %1684 = vmatprep.mubr.bf16.mxu0 %v485_v26 }
 0x156   :  { %1588 = vmatmul.mubr.bf16.gmra.mrb[44].mxu1 %v3120_v34 }
 0x157   :  { %1725 = vmatprep.mubr.bf16.mxu1 %v542_v0 }
 0x159   :  { %1685 = vmatmul.mubr.bf16.gmra.mrb[44].mxu0 %v3131_v4 }
 0x15a   :  { %1822 = vmatprep.mubr.bf16.mxu0 %v2941_v12  ;;  %v2694_v12 = vld [vmem:[#allocation7 + $0x218] sm:$0xff]  }
 0x15e   :  { %1726 = vmatmul.mubr.bf16.vlgmr.msra.gmra.mrb[48].mxu1 %v510_v13  ;;  %v2696_v13 = vld [vmem:[#allocation7 + $0x228] sm:$0xff]  }
 0x15f   :  { %2540 = vmatpush3.bf16.msra.mxu1 %v2691_v63  ;;  %1733 = vmatprep.mubr.bf16.mxu1 %v543_v17 }
 0x160   :  { %2533 = vmatprep.subr.bf16.mxu1 %v2692_v23 }
 0x161   :  { %1823 = vmatmul.mubr.bf16.vlgmr.msra.gmra.mrb[48].mxu0 %v2991_v60  ;;  %v2698_v60 = vld [vmem:[#allocation7 + $0x238] sm:$0xff]  }
 0x162   :  { %1830 = vmatprep.mubr.bf16.mxu0 %v2963_v32  ;;  %2501 = vmatpush3.bf16.msra.mxu0 %v2691_v63  ;;  %v2697_v32 = vld [vmem:[#allocation7 + $0x230] sm:$0xff]  }
 0x163   :  { %2541 = vmatpush3.bf16.msra.mxu1 %v2692_v23  ;;  %2502 = vmatprep.subr.bf16.mxu0 %v2692_v23 }
 0x164   :  { %2534 = vmatprep.subr.bf16.mxu1 %v2693_v30 }
 0x166   :  { %1734 = vmatmul.mubr.bf16.gmra.mrb[52].mxu1 %v511_v10  ;;  %2503 = vmatpush3.bf16.msra.mxu0 %v2692_v23  ;;  %v610_v10 = vpack.c.bf16 %v598_v7, %v2954_v24  ;;  %v3353_v24 = vpack.c.bf16 %v2989_v57, %v2982_v51  ;;  %v574_v51 = vld [vmem:[#allocation2 + $0x130] sm:$0xff]  ;;  %v3355_v57 = vpack.c.bf16 %v3029_v40, %v3022_v29 }
 0x167   :  { %1741 = vmatprep.mubr.bf16.mxu1 %v544_v61  ;;  %2542 = vmatpush3.bf16.msra.mxu1 %v2693_v30  ;;  %v638_v29 = vld [vmem:[#allocation2 + $0x132] sm:$0xff] }
 0x168   :  { %2535 = vmatprep.subr.bf16.mxu1 %v2694_v12  ;;  %2504 = vmatprep.subr.bf16.mxu0 %v2693_v30 }
 0x169   :  { %1831 = vmatmul.mubr.bf16.gmra.mrb[52].mxu0 %v3033_v42  ;;  %v630_v42 = vld [vmem:[#allocation2 + $0x92] sm:$0xff] }
 0x16a   :  { %1838 = vmatprep.mubr.bf16.mxu0 %v2973_v39  ;;  %2505 = vmatpush3.bf16.msra.mxu0 %v2693_v30  ;;  %v566_v39 = vld [vmem:[#allocation2 + $0x90] sm:$0xff]  ;;  %v642_v36 = vpack.c.bf16 %v630_v42, %v3149_v8 }
 0x16b   :  { %2543 = vmatpush3.bf16.msra.mxu1 %v2694_v12  ;;  %2506 = vmatprep.subr.bf16.mxu0 %v2694_v12  ;;  %v578_v27 = vpack.c.bf16 %v566_v39, %v3043_v49 }
 0x16c   :  { %2536 = vmatprep.subr.bf16.mxu1 %v2695_v5 }
 0x16e   :  { %1742 = vmatmul.mubr.bf16.gmra.mrb[56].mxu1 %v512_v46  ;;  %2507 = vmatpush3.bf16.msra.mxu0 %v2694_v12  ;;  %v547_v46 = vpack.c.bf16 %v3106_v25, %v3095_v47 }
 0x16f   :  { %1749 = vmatprep.mubr.bf16.mxu1 %v545_v1  ;;  %2544 = vmatpush3.bf16.msra.mxu1 %v2695_v5 }
 0x170   :  { %2537 = vmatprep.subr.bf16.mxu1 %v2696_v13  ;;  %2508 = vmatprep.subr.bf16.mxu0 %v2695_v5 }
 0x171   :  { %1839 = vmatmul.mubr.bf16.gmra.mrb[56].mxu0 %v3074_v31 }
 0x172   :  { %1846 = vmatprep.mubr.bf16.mxu0 %v610_v10  ;;  %2509 = vmatpush3.bf16.msra.mxu0 %v2695_v5 }
 0x173   :  { %2545 = vmatpush3.bf16.msra.mxu1 %v2696_v13  ;;  %2510 = vmatprep.subr.bf16.mxu0 %v2696_v13 }
 0x174   :  { %2538 = vmatprep.subr.bf16.mxu1 %v2697_v32 }
 0x176   :  { %1750 = vmatmul.mubr.bf16.gmra.mrb[60].mxu1 %v513_v35  ;;  %2511 = vmatpush3.bf16.msra.mxu0 %v2696_v13  ;;  %v541_v35 = vld [vmem:[#allocation2 + $0x122] sm:$0xff] }
 0x177   :  { %1757 = vmatprep.mubr.bf16.mxu1 %v546_v22  ;;  %2546 = vmatpush3.bf16.msra.mxu1 %v2697_v32  ;;  %v549_v54 = vpack.c.bf16 %v541_v35, %v3124_v48 }
 0x178   :  { %2539 = vmatprep.subr.bf16.mxu1 %v2698_v60  ;;  %2512 = vmatprep.subr.bf16.mxu0 %v2697_v32 }
 0x179   :  { %1847 = vmatmul.mubr.bf16.gmra.mrb[60].mxu0 %v578_v27 }
 0x17a   :  { %1854 = vmatprep.mubr.bf16.mxu0 %v3016_v20  ;;  %2513 = vmatpush3.bf16.msra.mxu0 %v2697_v32  ;;  %v614_v20 = vpack.c.bf16 %v606_v62, %v3029_v40  ;;  %v646_v40 = vpack.c.bf16 %v638_v29, %v541_v35 }
 0x17b   :  { %2547 = vmatpush3.bf16.msra.mxu1 %v2698_v60  ;;  %2514 = vmatprep.subr.bf16.mxu0 %v2698_v60 }
 0x17e   :  { %1758 = vmatmul.mubr.bf16.gmra.mrb[64].mxu1 %v514_v28  ;;  %2515 = vmatpush3.bf16.msra.mxu0 %v2698_v60  ;;  %v582_v28 = vpack.c.bf16 %v574_v51, %v3110_v41 }
 0x17f   :  { %1765 = vmatprep.mubr.bf16.mxu1 %v547_v46 }
 0x181   :  { %1855 = vmatmul.mubr.bf16.gmra.mrb[64].mxu0 %v3091_v38 }
 0x182   :  { %1862 = vmatprep.mubr.bf16.mxu0 %v3041_v45 }
 0x186   :  { %1766 = vmatmul.mubr.bf16.gmra.mrb[68].mxu1 %v3353_v24 }
 0x187   :  { %1773 = vmatprep.mubr.bf16.mxu1 %v548_v18 }
 0x189   :  { %1863 = vmatmul.mubr.bf16.gmra.mrb[68].mxu0 %v3104_v9 }
 0x18a   :  { %1870 = vmatprep.mubr.bf16.mxu0 %v3061_v58 }
 0x18e   :  { %1774 = vmatmul.mubr.bf16.gmra.mrb[72].mxu1 %v3354_v6 }
 0x18f   :  { %1781 = vmatprep.mubr.bf16.mxu1 %v549_v54 }
 0x191   :  { %1871 = vmatmul.mubr.bf16.gmra.mrb[72].mxu0 %v3120_v34 }
 0x192   :  { %1878 = vmatprep.mubr.bf16.mxu0 %v614_v20 }
 0x196   :  { %1782 = vmatmul.mubr.bf16.gmra.mrb[76].mxu1 %v3355_v57 }
 0x197   :  { %2520 = vmatprep.mubr.bf16.mxu1 %v3084_v52 }
 0x199   :  { %1879 = vmatmul.mubr.bf16.gmra.mrb[76].mxu0 %v582_v28 }
 0x19a   :  { %2516 = vmatprep.mubr.bf16.mxu0 %v3011_v15 }
 0x19e   :  { %2521 = vmatmul.mubr.bf16.vlgmr.msra.gmra.mrb[4].mxu1 %v642_v36 }
 0x19f   :  { %2524 = vmatprep.mubr.bf16.mxu1 %v3101_v56 }
 0x1a1   :  { %2517 = vmatmul.mubr.bf16.vlgmr.msra.gmra.mrb[80].mxu0 %v3057_v55 }
 0x1a6   :  { %2525 = vmatmul.mubr.bf16.gmra.mrb[8].mxu1 %v3116_v19 }
 0x1a7   :  { %2528 = vmatprep.mubr.bf16.mxu1 %v3131_v4 }
 0x1ae   :  { %2529 = vmatmul.mubr.bf16.gmra.mrb[12].mxu1 %v646_v40 }
 0x1f1   :  { %v2200_v43 = vpop.f32.mrb[16].mxu1 }
 0x1f2   :  { %v2201_v15 = vpop.f32.mrb[17].mxu1 }
 0x1f3   :  { %v2202_v45 = vadd.f32 %v2201_v15, %v2200_v43  ;;  %v2203_v49 = vpop.f32.mrb[18].mxu1 }
 0x1f4   :  { %v2264_v50 = vpop.f32.mrb[16].mxu0  ;;  %v2204_v58 = vpop.f32.mrb[19].mxu1 }
 0x1f5   :  { %v1534_v55 = vadd.f32 %v2202_v45, %v3199_v44  ;;  %v2205_v0 = vadd.f32 %v2204_v58, %v2203_v49  ;;  %v2265_v31 = vpop.f32.mrb[17].mxu0 }
 0x1f6   :  { %v2266_v33 = vadd.f32 %v2265_v31, %v2264_v50  ;;  %v2267_v4 = vpop.f32.mrb[18].mxu0 }
 0x1f7   :  { %v1537_v37 = vadd.f32 %v2205_v0, %v3199_v44  ;;  %v2268_v52 = vpop.f32.mrb[19].mxu0 }
 0x1f8   :  { %v3203_v63 = vadd.f32 %v2266_v33, %v1534_v55  ;;  %v2269_v21 = vadd.f32 %v2268_v52, %v2267_v4 }
 0x1f9   :  { %v2206_v38 = vpop.f32.mrb[20].mxu1 }
 0x1fa   :  { %v3205_v59 = vadd.f32 %v2269_v21, %v1537_v37  ;;  %v2207_v47 = vpop.f32.mrb[21].mxu1 }
 0x1fb   :  { %v2208_v56 = vadd.f32 %v2207_v47, %v2206_v38  ;;  %v2209_v9 = vpop.f32.mrb[22].mxu1 }
 0x1fc   :  { %v2270_v25 = vpop.f32.mrb[20].mxu0  ;;  %v2210_v11 = vpop.f32.mrb[23].mxu1 }
 0x1fd   :  { %v1542_v41 = vadd.f32 %v2208_v56, %v3199_v44  ;;  %v2211_v19 = vadd.f32 %v2210_v11, %v2209_v9  ;;  %v2271_v26 = vpop.f32.mrb[21].mxu0 }
 0x1fe   :  { %v2272_v34 = vadd.f32 %v2271_v26, %v2270_v25  ;;  %v2273_v3 = vpop.f32.mrb[22].mxu0 }
 0x1ff   :  { %v1545_v48 = vadd.f32 %v2211_v19, %v3199_v44  ;;  %v2274_v23 = vpop.f32.mrb[23].mxu0 }
 0x200   :  { %v3209_v17 = vadd.f32 %v2272_v34, %v1542_v41  ;;  %v2275_v30 = vadd.f32 %v2274_v23, %v2273_v3 }
 0x201   :  { %v2212_v12 = vpop.f32.mrb[24].mxu1 }
 0x202   :  { %v3211_v61 = vadd.f32 %v2275_v30, %v1545_v48  ;;  %v2213_v5 = vpop.f32.mrb[25].mxu1 }
 0x203   :  { %v2214_v8 = vadd.f32 %v2213_v5, %v2212_v12  ;;  %v2215_v13 = vpop.f32.mrb[26].mxu1 }
 0x204   :  { %v2276_v1 = vpop.f32.mrb[24].mxu0  ;;  %v2216_v7 = vpop.f32.mrb[27].mxu1 }
 0x205   :  { %v1550_v10 = vadd.f32 %v2214_v8, %v3199_v44  ;;  %v2217_v32 = vadd.f32 %v2216_v7, %v2215_v13  ;;  %v2277_v39 = vpop.f32.mrb[25].mxu0 }
 0x206   :  { %v2278_v60 = vadd.f32 %v2277_v39, %v2276_v1  ;;  %v2279_v22 = vpop.f32.mrb[26].mxu0 }
 0x207   :  { %v1553_v27 = vadd.f32 %v2217_v32, %v3199_v44  ;;  %v2280_v46 = vpop.f32.mrb[27].mxu0 }
 0x208   :  { %v3215_v18 = vadd.f32 %v2278_v60, %v1550_v10  ;;  %v2281_v24 = vadd.f32 %v2280_v46, %v2279_v22 }
 0x209   :  { %v2218_v35 = vpop.f32.mrb[28].mxu1 }
 0x20a   :  { %v3217_v54 = vadd.f32 %v2281_v24, %v1553_v27  ;;  %v2219_v62 = vpop.f32.mrb[29].mxu1 }
 0x20b   :  { %v2220_v6 = vadd.f32 %v2219_v62, %v2218_v35  ;;  %v2221_v20 = vpop.f32.mrb[30].mxu1 }
 0x20c   :  { %v2282_v51 = vpop.f32.mrb[28].mxu0  ;;  %v2222_v57 = vpop.f32.mrb[31].mxu1 }
 0x20d   :  { %v1558_v28 = vadd.f32 %v2220_v6, %v3199_v44  ;;  %v2223_v42 = vadd.f32 %v2222_v57, %v2221_v20  ;;  %v2283_v36 = vpop.f32.mrb[29].mxu0 }
 0x20e   :  { %v2284_v29 = vadd.f32 %v2283_v36, %v2282_v51  ;;  %v2285_v40 = vpop.f32.mrb[30].mxu0 }
 0x20f   :  { %v1561_v43 = vadd.f32 %v2223_v42, %v3199_v44  ;;  %v2286_v15 = vpop.f32.mrb[31].mxu0 }
 0x210   :  { %v3221_v45 = vadd.f32 %v2284_v29, %v1558_v28  ;;  %v2287_v49 = vadd.f32 %v2286_v15, %v2285_v40 }
 0x211   :  { %v2224_v50 = vpop.f32.mrb[32].mxu1 }
 0x212   :  { %v3223_v58 = vadd.f32 %v2287_v49, %v1561_v43  ;;  %v2225_v55 = vpop.f32.mrb[33].mxu1 }
 0x213   :  { %v2226_v0 = vadd.f32 %v2225_v55, %v2224_v50  ;;  %v2227_v31 = vpop.f32.mrb[34].mxu1 }
 0x214   :  { %v2288_v33 = vpop.f32.mrb[32].mxu0  ;;  %v2228_v4 = vpop.f32.mrb[35].mxu1 }
 0x215   :  { %v1566_v37 = vadd.f32 %v2226_v0, %v3199_v44  ;;  %v2229_v52 = vadd.f32 %v2228_v4, %v2227_v31  ;;  %v2289_v21 = vpop.f32.mrb[33].mxu0 }
 0x216   :  { %v2290_v38 = vadd.f32 %v2289_v21, %v2288_v33  ;;  %v2291_v47 = vpop.f32.mrb[34].mxu0 }
 0x217   :  { %v1569_v56 = vadd.f32 %v2229_v52, %v3199_v44  ;;  %v2292_v9 = vpop.f32.mrb[35].mxu0 }
 0x218   :  { %v3227_v25 = vadd.f32 %v2290_v38, %v1566_v37  ;;  %v2293_v11 = vadd.f32 %v2292_v9, %v2291_v47 }
 0x219   :  { %v2230_v41 = vpop.f32.mrb[36].mxu1 }
 0x21a   :  { %v3229_v19 = vadd.f32 %v2293_v11, %v1569_v56  ;;  %v2231_v26 = vpop.f32.mrb[37].mxu1 }
 0x21b   :  { %v2232_v34 = vadd.f32 %v2231_v26, %v2230_v41  ;;  %v2233_v3 = vpop.f32.mrb[38].mxu1 }
 0x21c   :  { %v2294_v48 = vpop.f32.mrb[36].mxu0  ;;  %v2234_v23 = vpop.f32.mrb[39].mxu1 }
 0x21d   :  { %v1574_v30 = vadd.f32 %v2232_v34, %v3199_v44  ;;  %v2235_v12 = vadd.f32 %v2234_v23, %v2233_v3  ;;  %v2295_v5 = vpop.f32.mrb[37].mxu0  ;;  %v3252_v23 = vld [vmem:[%s3349_s5] ss:$0 sm:$0xff]  ;;  %s2776_s5 = smov [#allocation9]  }
 0x21e   :  { %v2296_v8 = vadd.f32 %v2295_v5, %v2294_v48  ;;  %v2297_v13 = vpop.f32.mrb[38].mxu0  ;;  %s2037_s17 = sshll.u32 %s2776_s5, 4  ;;  %s2038_s17 = int_to_ptr.vmem [resolvable:$true] %s2037_s17 }
 0x21f   :  { %v1577_v1 = vadd.f32 %v2235_v12, %v3199_v44  ;;  %v2298_v7 = vpop.f32.mrb[39].mxu0  ;;  %s2743_s18 = scalar_lea.vmem %s2038_s17, 2048  ;;  %p2748_p3 = scmp.lt.s32.totalorder %s2038_s17, %s2038_s17 }
 0x220   :  { %v3233_v10 = vadd.f32 %v2296_v8, %v1574_v30  ;;  %v2299_v32 = vadd.f32 %v2298_v7, %v2297_v13  ;;  %v782_v7 = vadd.f32 %v3252_v23, %v3065_v2  ;;  %p2744_p2 = scmp.ne.s32.totalorder %s2038_s17, %s2743_s18  ;;  %p2749_p4 = scmp.lt.s32.totalorder %s2743_s18, %s2743_s18 }
 0x221   :  { %v2236_v39 = vpop.f32.mrb[40].mxu1 }
 0x222   :  { %v3235_v60 = vadd.f32 %v2299_v32, %v1577_v1  ;;  %v2237_v22 = vpop.f32.mrb[41].mxu1  ;;  %p2750_p5 = por %p2749_p4, %p2748_p3 }
 0x223   :  { %v2238_v27 = vadd.f32 %v2237_v22, %v2236_v39  ;;  %v2239_v46 = vpop.f32.mrb[42].mxu1 }
 0x224   :  { %v2300_v24 = vpop.f32.mrb[40].mxu0  ;;  %v2240_v35 = vpop.f32.mrb[43].mxu1  ;;  %p2751_p6 = pnand %p2750_p5, %p2744_p2 }
 0x225   :  { %v1582_v62 = vadd.f32 %v2238_v27, %v3199_v44  ;;  %v2241_v6 = vadd.f32 %v2240_v35, %v2239_v46  ;;  %v2301_v20 = vpop.f32.mrb[41].mxu0  ;;  %v785_v27 = vadd.f32 %v3252_v23, %v3071_v16  ;;  %v790_v16 = vadd.f32 %v3052_v53, %v3252_v23 }
 0x226   :  { %v2302_v51 = vadd.f32 %v2301_v20, %v2300_v24  ;;  %v2303_v57 = vpop.f32.mrb[42].mxu0 }
 0x227   :  { %v1585_v28 = vadd.f32 %v2241_v6, %v3199_v44  ;;  %v2304_v42 = vpop.f32.mrb[43].mxu0 }
 0x228   :  { %v3239_v36 = vadd.f32 %v2302_v51, %v1582_v62  ;;  %v2305_v29 = vadd.f32 %v2304_v42, %v2303_v57 }
 0x229   :  { %v2242_v40 = vpop.f32.mrb[44].mxu1 }
 0x22a   :  { %v3241_v43 = vadd.f32 %v2305_v29, %v1585_v28  ;;  %v2243_v15 = vpop.f32.mrb[45].mxu1 }
 0x22b   :  { %v2244_v49 = vadd.f32 %v2243_v15, %v2242_v40  ;;  %v2245_v50 = vpop.f32.mrb[46].mxu1 }
 0x22c   :  { %v2306_v55 = vpop.f32.mrb[44].mxu0  ;;  %v2246_v0 = vpop.f32.mrb[47].mxu1 }
 0x22d   :  { %v1590_v31 = vadd.f32 %v2244_v49, %v3199_v44  ;;  %v2247_v33 = vadd.f32 %v2246_v0, %v2245_v50  ;;  %v2307_v4 = vpop.f32.mrb[45].mxu0 }
 0x22e   :  { %v2308_v37 = vadd.f32 %v2307_v4, %v2306_v55  ;;  %v2309_v52 = vpop.f32.mrb[46].mxu0  ;;  %v793_v55 = vadd.f32 %v3068_v14, %v3252_v23 }
 0x22f   :  { %v1593_v21 = vadd.f32 %v2247_v33, %v3199_v44  ;;  %v2310_v38 = vpop.f32.mrb[47].mxu0 }
 0x230   :  { %v3245_v47 = vadd.f32 %v2308_v37, %v1590_v31  ;;  %v2311_v56 = vadd.f32 %v2310_v38, %v2309_v52 }
 0x231   :  { %v2328_v9 = vpop.f32.mrb[48].mxu1 }
 0x232   :  { %v3247_v11 = vadd.f32 %v2311_v56, %v1593_v21  ;;  %v2329_v41 = vpop.f32.mrb[49].mxu1 }
 0x233   :  { %v2330_v26 = vadd.f32 %v2329_v41, %v2328_v9  ;;  %v2331_v34 = vpop.f32.mrb[50].mxu1 }
 0x234   :  { %v2392_v3 = vpop.f32.mrb[48].mxu0  ;;  %v2332_v48 = vpop.f32.mrb[51].mxu1 }
 0x235   :  { %v1728_v30 = vadd.f32 %v2330_v26, %v3203_v63  ;;  %v2333_v44 = vadd.f32 %v2332_v48, %v2331_v34  ;;  %v2393_v12 = vpop.f32.mrb[49].mxu0 }
 0x236   :  { %v2394_v5 = vadd.f32 %v2393_v12, %v2392_v3  ;;  %v2395_v8 = vpop.f32.mrb[50].mxu0 }
 0x237   :  { %v1731_v13 = vadd.f32 %v2333_v44, %v3205_v59  ;;  %v2396_v1 = vpop.f32.mrb[51].mxu0 }
 0x238   :  { %v1825_v32 = vadd.f32 %v2394_v5, %v1728_v30  ;;  %v2397_v39 = vadd.f32 %v2396_v1, %v2395_v8 }
 0x239   :  { %v2334_v22 = vpop.f32.mrb[52].mxu1 }
 0x23a   :  { %v1828_v46 = vadd.f32 %v2397_v39, %v1731_v13  ;;  %v2335_v24 = vpop.f32.mrb[53].mxu1  ;;  %v3260_v35 = vadd.f32 %v1825_v32, %v782_v7 }
 0x23b   :  { %v2336_v63 = vadd.f32 %v2335_v24, %v2334_v22  ;;  %v2337_v62 = vpop.f32.mrb[54].mxu1 }
 0x23c   :  { %v2398_v6 = vpop.f32.mrb[52].mxu0  ;;  %v2338_v20 = vpop.f32.mrb[55].mxu1  ;;  %v3262_v51 = vadd.f32 %v1828_v46, %v785_v27 }
 0x23d   :  { %v1736_v59 = vadd.f32 %v2336_v63, %v3209_v17  ;;  %v2339_v57 = vadd.f32 %v2338_v20, %v2337_v62  ;;  %v2399_v2 = vpop.f32.mrb[53].mxu0 }
 0x23e   :  { %v2400_v28 = vadd.f32 %v2399_v2, %v2398_v6  ;;  %v2401_v42 = vpop.f32.mrb[54].mxu0 }
 0x23f   :  { %v1739_v29 = vadd.f32 %v2339_v57, %v3211_v61  ;;  %v2402_v40 = vpop.f32.mrb[55].mxu0 }
 0x240   :  { %v1833_v15 = vadd.f32 %v2400_v28, %v1736_v59  ;;  %v2403_v49 = vadd.f32 %v2402_v40, %v2401_v42 }
 0x241   :  { %v2340_v50 = vpop.f32.mrb[56].mxu1 }
 0x242   :  { %v1836_v0 = vadd.f32 %v2403_v49, %v1739_v29  ;;  %v2341_v31 = vpop.f32.mrb[57].mxu1  ;;  %v3270_v33 = vadd.f32 %v1833_v15, %v790_v16 }
 0x243   :  { %v2342_v17 = vadd.f32 %v2341_v31, %v2340_v50  ;;  %v2343_v4 = vpop.f32.mrb[58].mxu1 }
 0x244   :  { %v2404_v37 = vpop.f32.mrb[56].mxu0  ;;  %v2344_v52 = vpop.f32.mrb[59].mxu1  ;;  %v3272_v21 = vadd.f32 %v1836_v0, %v793_v55 }
 0x245   :  { %v1744_v61 = vadd.f32 %v2342_v17, %v3215_v18  ;;  %v2345_v38 = vadd.f32 %v2344_v52, %v2343_v4  ;;  %v2405_v53 = vpop.f32.mrb[57].mxu0 }
 0x246   :  { %v2406_v56 = vadd.f32 %v2405_v53, %v2404_v37  ;;  %v2407_v9 = vpop.f32.mrb[58].mxu0 }
 0x247   :  { %v1747_v41 = vadd.f32 %v2345_v38, %v3217_v54  ;;  %v2408_v26 = vpop.f32.mrb[59].mxu0 }
 0x248   :  { %v3276_v14 = vadd.f32 %v2406_v56, %v1744_v61  ;;  %v2409_v34 = vadd.f32 %v2408_v26, %v2407_v9 }
 0x249   :  { %v2346_v3 = vpop.f32.mrb[60].mxu1 }
 0x24a   :  { %v3278_v48 = vadd.f32 %v2409_v34, %v1747_v41  ;;  %v2347_v30 = vpop.f32.mrb[61].mxu1 }
 0x24b   :  { %v2348_v44 = vadd.f32 %v2347_v30, %v2346_v3  ;;  %v2349_v12 = vpop.f32.mrb[62].mxu1 }
 0x24c   :  { %v2410_v5 = vpop.f32.mrb[60].mxu0  ;;  %v2350_v8 = vpop.f32.mrb[63].mxu1 }
 0x24d   :  { %v1752_v18 = vadd.f32 %v2348_v44, %v3221_v45  ;;  %v2351_v13 = vadd.f32 %v2350_v8, %v2349_v12  ;;  %v2411_v1 = vpop.f32.mrb[61].mxu0 }
 0x24e   :  { %v2412_v7 = vadd.f32 %v2411_v1, %v2410_v5  ;;  %v2413_v32 = vpop.f32.mrb[62].mxu0 }
 0x24f   :  { %v1755_v54 = vadd.f32 %v2351_v13, %v3223_v58  ;;  %v2414_v39 = vpop.f32.mrb[63].mxu0 }
 0x250   :  { %v3282_v22 = vadd.f32 %v2412_v7, %v1752_v18  ;;  %v2415_v27 = vadd.f32 %v2414_v39, %v2413_v32 }
 0x251   :  { %v2352_v46 = vpop.f32.mrb[64].mxu1 }
 0x252   :  { %v3284_v24 = vadd.f32 %v2415_v27, %v1755_v54  ;;  %v2353_v63 = vpop.f32.mrb[65].mxu1 }
 0x253   :  { %v2354_v62 = vadd.f32 %v2353_v63, %v2352_v46  ;;  %v2355_v6 = vpop.f32.mrb[66].mxu1 }
 0x254   :  { %v2416_v20 = vpop.f32.mrb[64].mxu0  ;;  %v2356_v59 = vpop.f32.mrb[67].mxu1 }
 0x255   :  { %v1760_v45 = vadd.f32 %v2354_v62, %v3227_v25  ;;  %v2357_v57 = vadd.f32 %v2356_v59, %v2355_v6  ;;  %v2417_v2 = vpop.f32.mrb[65].mxu0 }
 0x256   :  { %v2418_v28 = vadd.f32 %v2417_v2, %v2416_v20  ;;  %v2419_v42 = vpop.f32.mrb[66].mxu0 }
 0x257   :  { %v1763_v58 = vadd.f32 %v2357_v57, %v3229_v19  ;;  %v2420_v29 = vpop.f32.mrb[67].mxu0 }
 0x258   :  { %v3288_v40 = vadd.f32 %v2418_v28, %v1760_v45  ;;  %v2421_v16 = vadd.f32 %v2420_v29, %v2419_v42  ;;  %v2560_v42 = vadd.f32 %v3252_v23, %v3282_v22  ;;  %v2562_v29 = vadd.f32 %v3252_v23, %v3276_v14 }
 0x259   :  { %v2358_v15 = vpop.f32.mrb[68].mxu1 }
 0x25a   :  { %v3290_v49 = vadd.f32 %v2421_v16, %v1763_v58  ;;  %v2359_v50 = vpop.f32.mrb[69].mxu1 }
 0x25b   :  { %v2360_v55 = vadd.f32 %v2359_v50, %v2358_v15  ;;  %v2361_v0 = vpop.f32.mrb[70].mxu1 }
 0x25c   :  { %v2422_v31 = vpop.f32.mrb[68].mxu0  ;;  %v2362_v17 = vpop.f32.mrb[71].mxu1 }
 0x25d   :  { %v1768_v25 = vadd.f32 %v2360_v55, %v3233_v10  ;;  %v2363_v4 = vadd.f32 %v2362_v17, %v2361_v0  ;;  %v2423_v37 = vpop.f32.mrb[69].mxu0 }
 0x25e   :  { %v2424_v52 = vadd.f32 %v2423_v37, %v2422_v31  ;;  %v2425_v61 = vpop.f32.mrb[70].mxu0 }
 0x25f   :  { %v1771_v19 = vadd.f32 %v2363_v4, %v3235_v60  ;;  %v2426_v38 = vpop.f32.mrb[71].mxu0 }
 0x260   :  { %v3294_v53 = vadd.f32 %v2424_v52, %v1768_v25  ;;  %v2427_v56 = vadd.f32 %v2426_v38, %v2425_v61 }
 0x261   :  { %v2364_v9 = vpop.f32.mrb[72].mxu1 }
 0x262   :  { %v3296_v41 = vadd.f32 %v2427_v56, %v1771_v19  ;;  %v2365_v26 = vpop.f32.mrb[73].mxu1 }
 0x263   :  { %v2366_v34 = vadd.f32 %v2365_v26, %v2364_v9  ;;  %v2367_v3 = vpop.f32.mrb[74].mxu1 }
 0x264   :  { %v2428_v30 = vpop.f32.mrb[72].mxu0  ;;  %v2368_v44 = vpop.f32.mrb[75].mxu1 }
 0x265   :  { %v1776_v10 = vadd.f32 %v2366_v34, %v3239_v36  ;;  %v2369_v12 = vadd.f32 %v2368_v44, %v2367_v3  ;;  %v2429_v5 = vpop.f32.mrb[73].mxu0 }
 0x266   :  { %v2430_v8 = vadd.f32 %v2429_v5, %v2428_v30  ;;  %v2431_v18 = vpop.f32.mrb[74].mxu0 }
 0x267   :  { %v1779_v60 = vadd.f32 %v2369_v12, %v3241_v43  ;;  %v2432_v13 = vpop.f32.mrb[75].mxu0 }
 0x268   :  { %v3300_v1 = vadd.f32 %v2430_v8, %v1776_v10  ;;  %v2433_v7 = vadd.f32 %v2432_v13, %v2431_v18 }
 0x269   :  { %v2370_v32 = vpop.f32.mrb[76].mxu1 }
 0x26a   :  { %v3302_v54 = vadd.f32 %v2433_v7, %v1779_v60  ;;  %v2371_v39 = vpop.f32.mrb[77].mxu1 }
 0x26b   :  { %v2372_v27 = vadd.f32 %v2371_v39, %v2370_v32  ;;  %v2373_v46 = vpop.f32.mrb[78].mxu1 }
 0x26c   :  { %v2434_v63 = vpop.f32.mrb[76].mxu0  ;;  %v2374_v62 = vpop.f32.mrb[79].mxu1 }
 0x26d   :  { %v1784_v36 = vadd.f32 %v2372_v27, %v3245_v47  ;;  %v2375_v6 = vadd.f32 %v2374_v62, %v2373_v46  ;;  %v2435_v20 = vpop.f32.mrb[77].mxu0  ;;  %v2564_v47 = vadd.f32 %v3252_v23, %v3284_v24  ;;  %v2578_v27 = vadd.f32 %v3252_v23, %v3300_v1 }
 0x26e   :  { %v2436_v59 = vadd.f32 %v2435_v20, %v2434_v63  ;;  %v2437_v45 = vpop.f32.mrb[78].mxu0 }
 0x26f   :  { %v1787_v43 = vadd.f32 %v2375_v6, %v3247_v11  ;;  %v2438_v57 = vpop.f32.mrb[79].mxu0  ;;  %v2566_v11 = vadd.f32 %v3252_v23, %v3278_v48  ;;  %v2582_v6 = vadd.f32 %v3252_v23, %v3302_v54 }
 0x270   :  { %v1881_v2 = vadd.f32 %v2436_v59, %v1784_v36  ;;  %v2439_v28 = vadd.f32 %v2438_v57, %v2437_v45 }
 0x271   :  { %v2522_v58 = vpop.f32.mrb[4].mxu1 }
 0x272   :  { %v1884_v16 = vadd.f32 %v2439_v28, %v1787_v43  ;;  %v2561_v15 = vadd.f32 %v2560_v42, %v2522_v58  ;;  %v1937_v50 = vpop.f32.mrb[5].mxu1  ;;  %v2576_v39 = vadd.f32 %v3252_v23, %v1881_v2 }
 0x273   :  { %v2563_v55 = vadd.f32 %v2562_v29, %v1937_v50  ;;  %v2523_v0 = vpop.f32.mrb[6].mxu1 }
 0x274   :  { %v2006_v31 = vmax.f32 %v2561_v15, 0.0  ;;  %v2518_v17 = vpop.f32.mrb[80].mxu0  ;;  %v2565_v25 = vadd.f32 %v2564_v47, %v2523_v0  ;;  %v1940_v4 = vpop.f32.mrb[7].mxu1  ;;  %v2580_v63 = vadd.f32 %v3252_v23, %v1884_v16 }
 0x275   :  { %v2004_v22 = vmax.f32 %v2563_v55, 0.0  ;;  %v2550_v37 = vadd.f32 %v3270_v33, %v2518_v17  ;;  %v1921_v52 = vpop.f32.mrb[81].mxu0  ;;  %v2567_v14 = vadd.f32 %v2566_v11, %v1940_v4  ;;  %v2568_v33 = vadd.f32 %v3252_v23, %v3294_v53 }
 0x276   :  { %2022 = vst [vmem:[#allocation9 + $0x30] sm:$0xff] %v2006_v31  ;;  %v2007_v61 = vmax.f32 %v2565_v25, 0.0  ;;  %v2553_v19 = vadd.f32 %v3260_v35, %v1921_v52  ;;  %v2519_v38 = vpop.f32.mrb[82].mxu0  ;;  %v2570_v35 = vadd.f32 %v3252_v23, %v3288_v40  ;;  %v2574_v53 = vadd.f32 %v3252_v23, %v3290_v49 }
 0x277   :  { %2020 = vst [vmem:[#allocation9 + $0x20] sm:$0xff] %v2004_v22  ;;  %v2002_v24 = vmax.f32 %v2550_v37, 0.0  ;;  %v2005_v56 = vmax.f32 %v2567_v14, 0.0  ;;  %v2556_v9 = vadd.f32 %v3272_v21, %v2519_v38  ;;  %v1924_v48 = vpop.f32.mrb[83].mxu0  ;;  %v2572_v21 = vadd.f32 %v3252_v23, %v3296_v41 }
 0x278   :  { %2023 = vst [vmem:[#allocation9 + $0x38] sm:$0xff] %v2007_v61  ;;  %v2000_v26 = vmax.f32 %v2553_v19, 0.0  ;;  %v2559_v34 = vadd.f32 %v3262_v51, %v1924_v48 }
 0x279   :  { %2018 = vst [vmem:[#allocation9 + $0x10] sm:$0xff] %v2002_v24  ;;  %2021 = vst [vmem:[#allocation9 + $0x28] sm:$0xff] %v2005_v56  ;;  %v2003_v3 = vmax.f32 %v2556_v9, 0.0  ;;  %v2526_v30 = vpop.f32.mrb[8].mxu1 }
 0x27a   :  { %2016 = vst [vmem:[#allocation9] sm:$0xff] %v2000_v26  ;;  %v2001_v44 = vmax.f32 %v2559_v34, 0.0  ;;  %v2569_v10 = vadd.f32 %v2568_v33, %v2526_v30  ;;  %v1953_v12 = vpop.f32.mrb[9].mxu1 }
 0x27b   :  { %2019 = vst [vmem:[#allocation9 + $0x18] sm:$0xff] %v2003_v3  ;;  %v2571_v5 = vadd.f32 %v2570_v35, %v1953_v12  ;;  %v2527_v51 = vpop.f32.mrb[10].mxu1 }
 0x27c   :  { %2017 = vst [vmem:[#allocation9 + $0x8] sm:$0xff] %v2001_v44  ;;  %v2010_v8 = vmax.f32 %v2569_v10, 0.0  ;;  %v2573_v18 = vadd.f32 %v2572_v21, %v2527_v51  ;;  %v1956_v60 = vpop.f32.mrb[11].mxu1 }
 0x27d   :  { %v2008_v13 = vmax.f32 %v2571_v5, 0.0  ;;  %v2575_v7 = vadd.f32 %v2574_v53, %v1956_v60 }
 0x27e   :  { %2026 = vst [vmem:[#allocation9 + $0x50] sm:$0xff] %v2010_v8  ;;  %v2011_v40 = vmax.f32 %v2573_v18, 0.0 }
 0x27f   :  { %2024 = vst [vmem:[#allocation9 + $0x40] sm:$0xff] %v2008_v13  ;;  %v2009_v32 = vmax.f32 %v2575_v7, 0.0 }
 0x280   :  { %2027 = vst [vmem:[#allocation9 + $0x58] sm:$0xff] %v2011_v40 }
 0x281   :  { %2025 = vst [vmem:[#allocation9 + $0x48] sm:$0xff] %v2009_v32  ;;  %v2530_v41 = vpop.f32.mrb[12].mxu1 }
 0x282   :  { %v2577_v46 = vadd.f32 %v2576_v39, %v2530_v41  ;;  %v1969_v49 = vpop.f32.mrb[13].mxu1 }
 0x283   :  { %v2579_v62 = vadd.f32 %v2578_v27, %v1969_v49  ;;  %v2531_v36 = vpop.f32.mrb[14].mxu1 }
 0x284   :  { %v2014_v20 = vmax.f32 %v2577_v46, 0.0  ;;  %v2581_v59 = vadd.f32 %v2580_v63, %v2531_v36  ;;  %v1972_v45 = vpop.f32.mrb[15].mxu1 }
 0x285   :  { %v2012_v43 = vmax.f32 %v2579_v62, 0.0  ;;  %v2583_v57 = vadd.f32 %v2582_v6, %v1972_v45 }
 0x286   :  { %2030 = vst [vmem:[#allocation9 + $0x70] sm:$0xff] %v2014_v20  ;;  %v2015_v2 = vmax.f32 %v2581_v59, 0.0 }
 0x287   :  { %2028 = vst [vmem:[#allocation9 + $0x60] sm:$0xff] %v2012_v43  ;;  %v2013_v1 = vmax.f32 %v2583_v57, 0.0 }
 0x288   :  { %2031 = vst [vmem:[#allocation9 + $0x78] sm:$0xff] %v2015_v2 }
 0x289   :  { %2029 = vst [vmem:[#allocation9 + $0x68] sm:$0xff] %v2013_v1 }
 0x28a   :  { %2754 = shalt.err (!%p2751_p6)
}
 0x28b   :  { %s2755_s21 = scalar_lea.hbm %s3352_s8, 2048 }
 0x28c   :  { %p2756_p7 = scmp.ne.s32.totalorder %s3352_s8, %s2755_s21  ;;  %p2759_p8 = scmp.lt.u32.totalorder %s2755_s21, %s3352_s8 }
 0x28e   :  { %p2761_p9 = pnand %p2759_p8, %p2756_p7 }
 0x290   :  { %2764 = shalt.err (!%p2761_p9)
}
 0x291   :  { %s2777_s26 = smov 128   ;;  %s2778_s27 = smov 8  }
 0x292   :  { %2043 = dma.vmem_to_hbm [thread:$0]  %s2038_s17, 2048, %s3352_s8, [#allocation6], %s2777_s26, %s2777_s26, %s2778_s27  }
 0x293   :  { %2769 = dma.done.wait [#allocation6], 2048  }
 0x294   :  { %2770 = vsyncadd [#allocation6], 4294965248 }
 0x295   :  { %2047 = vsyncpa [#allocation5], 1 }
 0x296   :  { %2048 = vsyncpa [#allocation8], 1 }
 0x297   :  { %2049 = vsyncpa [#allocation6], 1 }

</bundles_post_ra>
